<compile_context>
chip_gen: v6e
topology: v6e:2x2x1
jax: 0.10.0
libtpu: 0.0.40
codegen_flags: <defaults>
</compile_context>

<pallas_src>
import functools

import jax
import jax.numpy as jnp
from jax.experimental import pallas as pl
from jax.experimental.pallas import tpu as pltpu


def _snn_kernel(u_ref, x_ref, w_ref, out_ref, *, tau, v_threshold, v_reset):
    """Full T-step SNN forward for one batch tile.

    u_ref  : VMEM (T, TB, D) f32 -- Poisson-encoder uniforms in [0, 1)
    x_ref  : VMEM (TB, D)    f32 -- image intensities in [0, 1]
    w_ref  : VMEM (D, N)     f32 -- Linear weight, pre-transposed
    out_ref: VMEM (TB, N)    f32 -- spike counts / T
    """
    T, TB, D = u_ref.shape
    N = w_ref.shape[1]

    inv_tau = jnp.float32(1.0 / tau)
    v_th = jnp.float32(v_threshold)
    v_rst = jnp.float32(v_reset)

    x = x_ref[...]                                   # (TB, D)
    w = w_ref[...]                                   # (D, N)
    u = u_ref[...]                                   # (T, TB, D)

    # --- Poisson encoding for all T steps at once (single big VPU slab) -----
    s = (u <= x[None, :, :]).astype(jnp.float32)     # (T, TB, D)

    # --- Linear (no bias) on the whole spike slab ----------------------------
    if TB % 8 == 0:
        # Sublane-aligned tile: one large MXU call over the packed slab.
        h = jnp.dot(s.reshape(T * TB, D), w,
                    preferred_element_type=jnp.float32)        # (T*TB, N)
        hs = [h[t * TB:(t + 1) * TB, :] for t in range(T)]
    else:
        # Tiny batch tile (< 8 sublanes): avoid the (T,TB,D)->(T*TB,D)
        # relayout, issue T statically-unrolled small dots (MXU has slack).
        hs = [jnp.dot(s[t], w, preferred_element_type=jnp.float32)
              for t in range(T)]

    # --- LIF recurrence (charge / fire / hard reset), fully unrolled ---------
    v = jnp.full((TB, N), v_rst, jnp.float32)
    cnt = jnp.zeros((TB, N), jnp.float32)
    for t in range(T):
        v = v + (hs[t] - (v - v_rst)) * inv_tau     # charge (decay_input=True)
        mask = v >= v_th                            # fire (single compare)
        cnt = cnt + mask.astype(jnp.float32)
        v = jnp.where(mask, v_rst, v)               # hard reset

    out_ref[...] = cnt * jnp.float32(1.0 / T)


def _pick_batch_tile(B):
    """Batch tile: whole batch when small, else a sublane-aligned divisor.

    Keeps the double-buffered (T, TB, 784) f32 uniform slab in the low-MiB
    range (fits v7x's 64 MiB VMEM comfortably)."""
    if B <= 256:
        return B
    for tb in (256, 128, 64, 32, 16, 8):
        if B % tb == 0:
            return tb
    return B


def snn_forward(x, weight, u, *, tau, v_threshold=1.0, v_reset=0.0,
                batch_tile=None):
    """x: (B, 1, 28, 28) f32 in [0,1].  weight: (10, 784) f32 (nn.Linear
    layout).  u: (T, B, 784) f32 uniforms in [0,1) (Poisson encoder noise).
    Returns (B, 10) f32 firing rates."""
    B = x.shape[0]
    x_flat = x.reshape(B, -1).astype(jnp.float32)          # (B, D)
    D = x_flat.shape[1]
    w_t = jnp.transpose(weight).astype(jnp.float32)        # (D, N)
    N = w_t.shape[1]
    T = u.shape[0]
    assert u.shape == (T, B, D)

    TB = batch_tile if batch_tile is not None else _pick_batch_tile(B)
    assert B % TB == 0, (B, TB)
    grid = (B // TB,)

    kernel = functools.partial(
        _snn_kernel, tau=tau, v_threshold=v_threshold, v_reset=v_reset)

    compiler_params = None
    if jax.default_backend() == "tpu":
        compiler_params = pltpu.CompilerParams(
            dimension_semantics=("parallel",))

    return pl.pallas_call(
        kernel,
        out_shape=jax.ShapeDtypeStruct((B, N), jnp.float32),
        grid=grid,
        in_specs=[
            pl.BlockSpec((T, TB, D), lambda i: (0, i, 0)),   # uniforms
            pl.BlockSpec((TB, D), lambda i: (i, 0)),         # intensities
            pl.BlockSpec((D, N), lambda i: (0, 0)),          # W^T (replicated)
        ],
        out_specs=pl.BlockSpec((TB, N), lambda i: (i, 0)),
        compiler_params=compiler_params,
    )(u, x_flat, w_t)


def _snn_reference(x, weight, u, *, tau, v_threshold=1.0, v_reset=0.0):
    """Pure-JAX reference of the same forward pass (same uniforms)."""
    B = x.shape[0]
    x_flat = x.reshape(B, -1).astype(jnp.float32)
    w_t = jnp.transpose(weight).astype(jnp.float32)
    T = u.shape[0]
    s = (u <= x_flat[None]).astype(jnp.float32)              # (T, B, D)
    h = jnp.einsum("tbd,dn->tbn", s, w_t)                    # (T, B, N)
    v = jnp.full((B, w_t.shape[1]), v_reset, jnp.float32)
    cnt = jnp.zeros_like(v)
    for t in range(T):
        v = v + (h[t] - (v - v_reset)) / tau
        mask = v >= v_threshold
        cnt = cnt + mask.astype(jnp.float32)
        v = jnp.where(mask, v_reset, v)
    return cnt / T


if __name__ == "__main__":
    # Shapes implied by the module: Linear(28*28 -> 10), MNIST-like input.
    B, C, H, W = 2, 1, 28, 28
    T = 8
    TAU = 2.0

    key = jax.random.PRNGKey(0)
    k_x, k_w, k_u = jax.random.split(key, 3)

    # Input "image" intensities in [0, 1] (Poisson encoder expects this range).
    x = jax.random.uniform(k_x, (B, C, H, W), dtype=jnp.float32)

    # Deterministic Linear weight init (nn.Linear-style uniform bound).
    bound = 1.0 / float(jnp.sqrt(jnp.float32(H * W)))
    weight = jax.random.uniform(
        k_w, (10, H * W), minval=-bound, maxval=bound, dtype=jnp.float32)

    # Poisson-encoder uniforms for all T steps (role of torch.rand_like(x)).
    u = jax.random.uniform(k_u, (T, B, H * W), dtype=jnp.float32)

    out = snn_forward(x, weight, u, tau=TAU, v_threshold=1.0, v_reset=0.0)
    out = jax.block_until_ready(out)

    ref = _snn_reference(x, weight, u, tau=TAU, v_threshold=1.0, v_reset=0.0)

    assert out.shape == (B, 10)
    assert bool(jnp.all(jnp.isfinite(out)))
    # Firing rates must lie in [0, 1].
    assert bool(jnp.all(out >= 0.0)) and bool(jnp.all(out <= 1.0))
    # Match the pure-JAX reference (allow <= one spike of threshold-tie slack
    # from MXU-vs-XLA matmul rounding differences).
    max_err = float(jnp.max(jnp.abs(out - ref)))
    assert max_err <= (1.0 / T) + 1e-6, max_err

    print("KERNEL_OK")
</pallas_src>

<mosaic_0001>
module attributes {stable_mosaic.version = 11 : i64} {
  func.func @_snn_kernel(%arg0: i32, %arg1: memref<8x2x784xf32, #tpu.memory_space<vmem>>, %arg2: memref<2x784xf32, #tpu.memory_space<vmem>>, %arg3: memref<784x10xf32, #tpu.memory_space<vmem>>, %arg4: memref<2x10xf32, #tpu.memory_space<vmem>>) attributes {dimension_semantics = [#tpu.dimension_semantics<arbitrary>], iteration_bounds = array<i64: 1>, scalar_prefetch = 0 : i64, scratch_operands = 0 : i64, tpu.core_type = #tpu.core_type<tc>, window_params = [{transform_indices = @transform_0, window_bounds = array<i64: 8, 2, 784>}, {transform_indices = @transform_1, window_bounds = array<i64: 2, 784>}, {pipeline_mode = #tpu.pipeline_mode<synchronous>, transform_indices = @transform_2, window_bounds = array<i64: 784, 10>}, {transform_indices = @transform_3, window_bounds = array<i64: 2, 10>}]} {
    %c0 = arith.constant 0 : index
    %c0_0 = arith.constant 0 : index
    %0 = vector.load %arg2[%c0, %c0_0] : memref<2x784xf32, #tpu.memory_space<vmem>>, vector<2x784xf32>
    %c0_1 = arith.constant 0 : index
    %c0_2 = arith.constant 0 : index
    %1 = vector.load %arg3[%c0_1, %c0_2] : memref<784x10xf32, #tpu.memory_space<vmem>>, vector<784x10xf32>
    %c0_3 = arith.constant 0 : index
    %c0_4 = arith.constant 0 : index
    %c0_5 = arith.constant 0 : index
    %2 = vector.load %arg1[%c0_3, %c0_4, %c0_5] : memref<8x2x784xf32, #tpu.memory_space<vmem>>, vector<8x2x784xf32>
    %3 = vector.shape_cast %0 : vector<2x784xf32> to vector<1x2x784xf32>
    %4 = vector.broadcast %3 : vector<1x2x784xf32> to vector<8x2x784xf32>
    %5 = arith.cmpf ole, %2, %4 : vector<8x2x784xf32>
    %6 = arith.extui %5 : vector<8x2x784xi1> to vector<8x2x784xi32>
    %7 = arith.sitofp %6 : vector<8x2x784xi32> to vector<8x2x784xf32>
    %8 = vector.extract_strided_slice %7 {offsets = [0, 0, 0], sizes = [1, 2, 784], strides = [1, 1, 1]} : vector<8x2x784xf32> to vector<1x2x784xf32>
    %9 = vector.shape_cast %8 : vector<1x2x784xf32> to vector<2x784xf32>
    %cst = arith.constant dense<0.000000e+00> : vector<2x10xf32>
    %10 = tpu.matmul %9, %1, %cst {dimension_numbers = #tpu.dot_dimension_numbers<[1], [0], [0], [1], [0, 0, 1, 1], [], []>} : vector<2x784xf32>, vector<784x10xf32>, vector<2x10xf32> -> vector<2x10xf32>
    %11 = vector.extract_strided_slice %7 {offsets = [1, 0, 0], sizes = [1, 2, 784], strides = [1, 1, 1]} : vector<8x2x784xf32> to vector<1x2x784xf32>
    %12 = vector.shape_cast %11 : vector<1x2x784xf32> to vector<2x784xf32>
    %cst_6 = arith.constant dense<0.000000e+00> : vector<2x10xf32>
    %13 = tpu.matmul %12, %1, %cst_6 {dimension_numbers = #tpu.dot_dimension_numbers<[1], [0], [0], [1], [0, 0, 1, 1], [], []>} : vector<2x784xf32>, vector<784x10xf32>, vector<2x10xf32> -> vector<2x10xf32>
    %14 = vector.extract_strided_slice %7 {offsets = [2, 0, 0], sizes = [1, 2, 784], strides = [1, 1, 1]} : vector<8x2x784xf32> to vector<1x2x784xf32>
    %15 = vector.shape_cast %14 : vector<1x2x784xf32> to vector<2x784xf32>
    %cst_7 = arith.constant dense<0.000000e+00> : vector<2x10xf32>
    %16 = tpu.matmul %15, %1, %cst_7 {dimension_numbers = #tpu.dot_dimension_numbers<[1], [0], [0], [1], [0, 0, 1, 1], [], []>} : vector<2x784xf32>, vector<784x10xf32>, vector<2x10xf32> -> vector<2x10xf32>
    %17 = vector.extract_strided_slice %7 {offsets = [3, 0, 0], sizes = [1, 2, 784], strides = [1, 1, 1]} : vector<8x2x784xf32> to vector<1x2x784xf32>
    %18 = vector.shape_cast %17 : vector<1x2x784xf32> to vector<2x784xf32>
    %cst_8 = arith.constant dense<0.000000e+00> : vector<2x10xf32>
    %19 = tpu.matmul %18, %1, %cst_8 {dimension_numbers = #tpu.dot_dimension_numbers<[1], [0], [0], [1], [0, 0, 1, 1], [], []>} : vector<2x784xf32>, vector<784x10xf32>, vector<2x10xf32> -> vector<2x10xf32>
    %20 = vector.extract_strided_slice %7 {offsets = [4, 0, 0], sizes = [1, 2, 784], strides = [1, 1, 1]} : vector<8x2x784xf32> to vector<1x2x784xf32>
    %21 = vector.shape_cast %20 : vector<1x2x784xf32> to vector<2x784xf32>
    %cst_9 = arith.constant dense<0.000000e+00> : vector<2x10xf32>
    %22 = tpu.matmul %21, %1, %cst_9 {dimension_numbers = #tpu.dot_dimension_numbers<[1], [0], [0], [1], [0, 0, 1, 1], [], []>} : vector<2x784xf32>, vector<784x10xf32>, vector<2x10xf32> -> vector<2x10xf32>
    %23 = vector.extract_strided_slice %7 {offsets = [5, 0, 0], sizes = [1, 2, 784], strides = [1, 1, 1]} : vector<8x2x784xf32> to vector<1x2x784xf32>
    %24 = vector.shape_cast %23 : vector<1x2x784xf32> to vector<2x784xf32>
    %cst_10 = arith.constant dense<0.000000e+00> : vector<2x10xf32>
    %25 = tpu.matmul %24, %1, %cst_10 {dimension_numbers = #tpu.dot_dimension_numbers<[1], [0], [0], [1], [0, 0, 1, 1], [], []>} : vector<2x784xf32>, vector<784x10xf32>, vector<2x10xf32> -> vector<2x10xf32>
    %26 = vector.extract_strided_slice %7 {offsets = [6, 0, 0], sizes = [1, 2, 784], strides = [1, 1, 1]} : vector<8x2x784xf32> to vector<1x2x784xf32>
    %27 = vector.shape_cast %26 : vector<1x2x784xf32> to vector<2x784xf32>
    %cst_11 = arith.constant dense<0.000000e+00> : vector<2x10xf32>
    %28 = tpu.matmul %27, %1, %cst_11 {dimension_numbers = #tpu.dot_dimension_numbers<[1], [0], [0], [1], [0, 0, 1, 1], [], []>} : vector<2x784xf32>, vector<784x10xf32>, vector<2x10xf32> -> vector<2x10xf32>
    %29 = vector.extract_strided_slice %7 {offsets = [7, 0, 0], sizes = [1, 2, 784], strides = [1, 1, 1]} : vector<8x2x784xf32> to vector<1x2x784xf32>
    %30 = vector.shape_cast %29 : vector<1x2x784xf32> to vector<2x784xf32>
    %cst_12 = arith.constant dense<0.000000e+00> : vector<2x10xf32>
    %31 = tpu.matmul %30, %1, %cst_12 {dimension_numbers = #tpu.dot_dimension_numbers<[1], [0], [0], [1], [0, 0, 1, 1], [], []>} : vector<2x784xf32>, vector<784x10xf32>, vector<2x10xf32> -> vector<2x10xf32>
    %cst_13 = arith.constant 0.000000e+00 : f32
    %32 = vector.broadcast %cst_13 : f32 to vector<2x10xf32>
    %cst_14 = arith.constant 0.000000e+00 : f32
    %33 = vector.broadcast %cst_14 : f32 to vector<2x10xf32>
    %cst_15 = arith.constant 0.000000e+00 : f32
    %34 = vector.broadcast %cst_15 : f32 to vector<2x10xf32>
    %35 = arith.subf %32, %34 : vector<2x10xf32>
    %36 = arith.subf %10, %35 : vector<2x10xf32>
    %cst_16 = arith.constant 5.000000e-01 : f32
    %37 = vector.broadcast %cst_16 : f32 to vector<2x10xf32>
    %38 = arith.mulf %36, %37 : vector<2x10xf32>
    %39 = arith.addf %32, %38 : vector<2x10xf32>
    %cst_17 = arith.constant 1.000000e+00 : f32
    %40 = vector.broadcast %cst_17 : f32 to vector<2x10xf32>
    %41 = arith.cmpf oge, %39, %40 : vector<2x10xf32>
    %42 = arith.extui %41 : vector<2x10xi1> to vector<2x10xi32>
    %43 = arith.sitofp %42 : vector<2x10xi32> to vector<2x10xf32>
    %44 = arith.addf %33, %43 : vector<2x10xf32>
    %cst_18 = arith.constant 0.000000e+00 : f32
    %45 = vector.broadcast %cst_18 : f32 to vector<2x10xf32>
    %46 = arith.select %41, %45, %39 : vector<2x10xi1>, vector<2x10xf32>
    %cst_19 = arith.constant 0.000000e+00 : f32
    %47 = vector.broadcast %cst_19 : f32 to vector<2x10xf32>
    %48 = arith.subf %46, %47 : vector<2x10xf32>
    %49 = arith.subf %13, %48 : vector<2x10xf32>
    %cst_20 = arith.constant 5.000000e-01 : f32
    %50 = vector.broadcast %cst_20 : f32 to vector<2x10xf32>
    %51 = arith.mulf %49, %50 : vector<2x10xf32>
    %52 = arith.addf %46, %51 : vector<2x10xf32>
    %cst_21 = arith.constant 1.000000e+00 : f32
    %53 = vector.broadcast %cst_21 : f32 to vector<2x10xf32>
    %54 = arith.cmpf oge, %52, %53 : vector<2x10xf32>
    %55 = arith.extui %54 : vector<2x10xi1> to vector<2x10xi32>
    %56 = arith.sitofp %55 : vector<2x10xi32> to vector<2x10xf32>
    %57 = arith.addf %44, %56 : vector<2x10xf32>
    %cst_22 = arith.constant 0.000000e+00 : f32
    %58 = vector.broadcast %cst_22 : f32 to vector<2x10xf32>
    %59 = arith.select %54, %58, %52 : vector<2x10xi1>, vector<2x10xf32>
    %cst_23 = arith.constant 0.000000e+00 : f32
    %60 = vector.broadcast %cst_23 : f32 to vector<2x10xf32>
    %61 = arith.subf %59, %60 : vector<2x10xf32>
    %62 = arith.subf %16, %61 : vector<2x10xf32>
    %cst_24 = arith.constant 5.000000e-01 : f32
    %63 = vector.broadcast %cst_24 : f32 to vector<2x10xf32>
    %64 = arith.mulf %62, %63 : vector<2x10xf32>
    %65 = arith.addf %59, %64 : vector<2x10xf32>
    %cst_25 = arith.constant 1.000000e+00 : f32
    %66 = vector.broadcast %cst_25 : f32 to vector<2x10xf32>
    %67 = arith.cmpf oge, %65, %66 : vector<2x10xf32>
    %68 = arith.extui %67 : vector<2x10xi1> to vector<2x10xi32>
    %69 = arith.sitofp %68 : vector<2x10xi32> to vector<2x10xf32>
    %70 = arith.addf %57, %69 : vector<2x10xf32>
    %cst_26 = arith.constant 0.000000e+00 : f32
    %71 = vector.broadcast %cst_26 : f32 to vector<2x10xf32>
    %72 = arith.select %67, %71, %65 : vector<2x10xi1>, vector<2x10xf32>
    %cst_27 = arith.constant 0.000000e+00 : f32
    %73 = vector.broadcast %cst_27 : f32 to vector<2x10xf32>
    %74 = arith.subf %72, %73 : vector<2x10xf32>
    %75 = arith.subf %19, %74 : vector<2x10xf32>
    %cst_28 = arith.constant 5.000000e-01 : f32
    %76 = vector.broadcast %cst_28 : f32 to vector<2x10xf32>
    %77 = arith.mulf %75, %76 : vector<2x10xf32>
    %78 = arith.addf %72, %77 : vector<2x10xf32>
    %cst_29 = arith.constant 1.000000e+00 : f32
    %79 = vector.broadcast %cst_29 : f32 to vector<2x10xf32>
    %80 = arith.cmpf oge, %78, %79 : vector<2x10xf32>
    %81 = arith.extui %80 : vector<2x10xi1> to vector<2x10xi32>
    %82 = arith.sitofp %81 : vector<2x10xi32> to vector<2x10xf32>
    %83 = arith.addf %70, %82 : vector<2x10xf32>
    %cst_30 = arith.constant 0.000000e+00 : f32
    %84 = vector.broadcast %cst_30 : f32 to vector<2x10xf32>
    %85 = arith.select %80, %84, %78 : vector<2x10xi1>, vector<2x10xf32>
    %cst_31 = arith.constant 0.000000e+00 : f32
    %86 = vector.broadcast %cst_31 : f32 to vector<2x10xf32>
    %87 = arith.subf %85, %86 : vector<2x10xf32>
    %88 = arith.subf %22, %87 : vector<2x10xf32>
    %cst_32 = arith.constant 5.000000e-01 : f32
    %89 = vector.broadcast %cst_32 : f32 to vector<2x10xf32>
    %90 = arith.mulf %88, %89 : vector<2x10xf32>
    %91 = arith.addf %85, %90 : vector<2x10xf32>
    %cst_33 = arith.constant 1.000000e+00 : f32
    %92 = vector.broadcast %cst_33 : f32 to vector<2x10xf32>
    %93 = arith.cmpf oge, %91, %92 : vector<2x10xf32>
    %94 = arith.extui %93 : vector<2x10xi1> to vector<2x10xi32>
    %95 = arith.sitofp %94 : vector<2x10xi32> to vector<2x10xf32>
    %96 = arith.addf %83, %95 : vector<2x10xf32>
    %cst_34 = arith.constant 0.000000e+00 : f32
    %97 = vector.broadcast %cst_34 : f32 to vector<2x10xf32>
    %98 = arith.select %93, %97, %91 : vector<2x10xi1>, vector<2x10xf32>
    %cst_35 = arith.constant 0.000000e+00 : f32
    %99 = vector.broadcast %cst_35 : f32 to vector<2x10xf32>
    %100 = arith.subf %98, %99 : vector<2x10xf32>
    %101 = arith.subf %25, %100 : vector<2x10xf32>
    %cst_36 = arith.constant 5.000000e-01 : f32
    %102 = vector.broadcast %cst_36 : f32 to vector<2x10xf32>
    %103 = arith.mulf %101, %102 : vector<2x10xf32>
    %104 = arith.addf %98, %103 : vector<2x10xf32>
    %cst_37 = arith.constant 1.000000e+00 : f32
    %105 = vector.broadcast %cst_37 : f32 to vector<2x10xf32>
    %106 = arith.cmpf oge, %104, %105 : vector<2x10xf32>
    %107 = arith.extui %106 : vector<2x10xi1> to vector<2x10xi32>
    %108 = arith.sitofp %107 : vector<2x10xi32> to vector<2x10xf32>
    %109 = arith.addf %96, %108 : vector<2x10xf32>
    %cst_38 = arith.constant 0.000000e+00 : f32
    %110 = vector.broadcast %cst_38 : f32 to vector<2x10xf32>
    %111 = arith.select %106, %110, %104 : vector<2x10xi1>, vector<2x10xf32>
    %cst_39 = arith.constant 0.000000e+00 : f32
    %112 = vector.broadcast %cst_39 : f32 to vector<2x10xf32>
    %113 = arith.subf %111, %112 : vector<2x10xf32>
    %114 = arith.subf %28, %113 : vector<2x10xf32>
    %cst_40 = arith.constant 5.000000e-01 : f32
    %115 = vector.broadcast %cst_40 : f32 to vector<2x10xf32>
    %116 = arith.mulf %114, %115 : vector<2x10xf32>
    %117 = arith.addf %111, %116 : vector<2x10xf32>
    %cst_41 = arith.constant 1.000000e+00 : f32
    %118 = vector.broadcast %cst_41 : f32 to vector<2x10xf32>
    %119 = arith.cmpf oge, %117, %118 : vector<2x10xf32>
    %120 = arith.extui %119 : vector<2x10xi1> to vector<2x10xi32>
    %121 = arith.sitofp %120 : vector<2x10xi32> to vector<2x10xf32>
    %122 = arith.addf %109, %121 : vector<2x10xf32>
    %cst_42 = arith.constant 0.000000e+00 : f32
    %123 = vector.broadcast %cst_42 : f32 to vector<2x10xf32>
    %124 = arith.select %119, %123, %117 : vector<2x10xi1>, vector<2x10xf32>
    %cst_43 = arith.constant 0.000000e+00 : f32
    %125 = vector.broadcast %cst_43 : f32 to vector<2x10xf32>
    %126 = arith.subf %124, %125 : vector<2x10xf32>
    %127 = arith.subf %31, %126 : vector<2x10xf32>
    %cst_44 = arith.constant 5.000000e-01 : f32
    %128 = vector.broadcast %cst_44 : f32 to vector<2x10xf32>
    %129 = arith.mulf %127, %128 : vector<2x10xf32>
    %130 = arith.addf %124, %129 : vector<2x10xf32>
    %cst_45 = arith.constant 1.000000e+00 : f32
    %131 = vector.broadcast %cst_45 : f32 to vector<2x10xf32>
    %132 = arith.cmpf oge, %130, %131 : vector<2x10xf32>
    %133 = arith.extui %132 : vector<2x10xi1> to vector<2x10xi32>
    %134 = arith.sitofp %133 : vector<2x10xi32> to vector<2x10xf32>
    %135 = arith.addf %122, %134 : vector<2x10xf32>
    %cst_46 = arith.constant 1.250000e-01 : f32
    %136 = vector.broadcast %cst_46 : f32 to vector<2x10xf32>
    %137 = arith.mulf %135, %136 : vector<2x10xf32>
    %c0_47 = arith.constant 0 : index
    %c0_48 = arith.constant 0 : index
    %138 = vector.load %arg4[%c0_47, %c0_48] : memref<2x10xf32, #tpu.memory_space<vmem>>, vector<2x10xf32>
    tpu.vector_store %arg4[%c0_47, %c0_48], %137 {strides = array<i32>} : memref<2x10xf32, #tpu.memory_space<vmem>>, vector<2x10xf32>,
    return
  }
  func.func @transform_0(%arg0: i32) -> (i32, i32, i32) {
    %c0_i32 = arith.constant 0 : i32
    %c0_i32_0 = arith.constant 0 : i32
    %c0_i32_1 = arith.constant 0 : i32
    return %c0_i32, %arg0, %c0_i32_0 : i32, i32, i32
  }
  func.func @transform_1(%arg0: i32) -> (i32, i32) {
    %c0_i32 = arith.constant 0 : i32
    %c0_i32_0 = arith.constant 0 : i32
    return %arg0, %c0_i32 : i32, i32
  }
  func.func @transform_2(%arg0: i32) -> (i32, i32) {
    %c0_i32 = arith.constant 0 : i32
    %c0_i32_0 = arith.constant 0 : i32
    %c0_i32_1 = arith.constant 0 : i32
    return %c0_i32, %c0_i32_0 : i32, i32
  }
  func.func @transform_3(%arg0: i32) -> (i32, i32) {
    %c0_i32 = arith.constant 0 : i32
    %c0_i32_0 = arith.constant 0 : i32
    return %arg0, %c0_i32 : i32, i32
  }
}

</mosaic_0001>

<bundles_post_ra>
// kernel: tpu_custom_call.1
= control target key start
LH: loop header
LB: loop body
LE: loop exit
PB: predicated region body
PF: predicated region fallthrough
CT: control target
= control target key end

     0   :  { %v3922_v30 = vmov 1983009808   ;;  %v185_v32 = vlaneseq  ;;  %v5994_v61 = vmov 0.0   ;;  %s5990_s0 = inlined_call_operand.vmem [shape: f32[8,2,784], index: 0, kind: input, shape index: {}]   ;;  %s5991_s1 = inlined_call_operand.vmem [shape: f32[2,784], index: 1, kind: input, shape index: {}]   ;;  %s5992_s2 = inlined_call_operand.vmem [shape: f32[784,10], index: 2, kind: input, shape index: {}]   ;;  %s5993_s3 = inlined_call_operand.hbm [shape: f32[2,10], index: 3, kind: output, shape index: {}]  }
   0x1   :  { %v3949_v0 = vld [vmem:[%s5992_s2 + $0xf8] sm:$0xff]  ;;  %v3971_v4 = vld [vmem:[%s5992_s2 + $0xf0] sm:$0xff]  ;;  %v3993_v8 = vld [vmem:[%s5992_s2 + $0xe8] sm:$0xff]  ;;  %v183_v31 = vunpack.c.l.s4 %v3922_v30 }
   0x2   :  { %6312 = vst [vmem:[#allocation5_spill] sm:$0xff] %v3949_v0  ;;  %v3954_v1 = vld [vmem:[%s5992_s2 + $0x1f8] sm:$0xff]  ;;  %2875 = vmatprep.subr.mxu0 %v3949_v0  ;;  %6315 = vst [vmem:[#allocation8_spill] sm:$0xff] %v3971_v4  ;;  %v3976_v5 = vld [vmem:[%s5992_s2 + $0x1f0] sm:$0xff]  ;;  %v186_v42 = vshrl.u32 %v185_v32, 7 }
   0x3   :  { %v3959_v2 = vld [vmem:[%s5992_s2 + $0x78] sm:$0xff]  ;;  %2910 = vmatprep.subr.mxu1 %v3954_v1  ;;  %6316 = vst [vmem:[#allocation9_spill] sm:$0xff] %v3976_v5  ;;  %v3983_v6 = vld [vmem:[%s5992_s2 + $0x70] sm:$0xff]  ;;  %6319 = vst [vmem:[#allocation12_spill] sm:$0xff] %v3993_v8  ;;  %v184_v41 = vunpack.c.0.s8 %v183_v31 }
   0x4   :  { %6313 = vst [vmem:[#allocation6_spill] sm:$0xff] %v3959_v2  ;;  %v3966_v3 = vld [vmem:[%s5992_s2 + $0x178] sm:$0xff]  ;;  %2876 = vmatpush3.msra.mxu0 %v3959_v2  ;;  %6317 = vst [vmem:[#allocation10_spill] sm:$0xff] %v3983_v6  ;;  %v3988_v7 = vld [vmem:[%s5992_s2 + $0x170] sm:$0xff] }
   0x5   :  { %6314 = vst [vmem:[#allocation7_spill] sm:$0xff] %v3966_v3  ;;  %2911 = vmatpush3.msra.mxu1 %v3966_v3  ;;  %6318 = vst [vmem:[#allocation11_spill] sm:$0xff] %v3988_v7  ;;  %2877 = vmatprep.subr.mxu0 %v3971_v4  ;;  %v4000_v9 = vld [vmem:[%s5992_s2 + $0x1e8] sm:$0xff]  ;;  %v4017_v12 = vld [vmem:[%s5992_s2 + $0xe0] sm:$0xff]  ;;  %v4221_v52 = vsub.s32 %v184_v41, %v186_v42 }
   0x6   :  { %2912 = vmatprep.subr.mxu1 %v3976_v5  ;;  %6320 = vst [vmem:[#allocation13_spill] sm:$0xff] %v4000_v9  ;;  %v4005_v10 = vld [vmem:[%s5992_s2 + $0x68] sm:$0xff]  ;;  %2878 = vmatpush3.msra.mxu0 %v3983_v6  ;;  %6323 = vst [vmem:[#allocation16_spill] sm:$0xff] %v4017_v12  ;;  %v4022_v13 = vld [vmem:[%s5992_s2 + $0x1e0] sm:$0xff] }
   0x7   :  { %6321 = vst [vmem:[#allocation14_spill] sm:$0xff] %v4005_v10  ;;  %v4010_v11 = vld [vmem:[%s5992_s2 + $0x168] sm:$0xff]  ;;  %2913 = vmatpush3.msra.mxu1 %v3988_v7  ;;  %6324 = vst [vmem:[#allocation17_spill] sm:$0xff] %v4022_v13  ;;  %2879 = vmatprep.subr.mxu0 %v3993_v8  ;;  %v4029_v14 = vld [vmem:[%s5992_s2 + $0x60] sm:$0xff] }
   0x8   :  { %6322 = vst [vmem:[#allocation15_spill] sm:$0xff] %v4010_v11  ;;  %2914 = vmatprep.subr.mxu1 %v4000_v9  ;;  %6325 = vst [vmem:[#allocation18_spill] sm:$0xff] %v4029_v14  ;;  %v4034_v15 = vld [vmem:[%s5992_s2 + $0x160] sm:$0xff]  ;;  %2880 = vmatpush3.msra.mxu0 %v4005_v10  ;;  %v4041_v16 = vld [vmem:[%s5992_s2 + $0xd8] sm:$0xff] }
   0x9   :  { %6326 = vst [vmem:[#allocation19_spill] sm:$0xff] %v4034_v15  ;;  %2915 = vmatpush3.msra.mxu1 %v4010_v11  ;;  %6327 = vst [vmem:[#allocation20_spill] sm:$0xff] %v4041_v16  ;;  %v4046_v17 = vld [vmem:[%s5992_s2 + $0x1d8] sm:$0xff]  ;;  %2881 = vmatprep.subr.mxu0 %v4017_v12  ;;  %v4065_v20 = vld [vmem:[%s5992_s2 + $0xd0] sm:$0xff] }
   0xa   :  { %6328 = vst [vmem:[#allocation21_spill] sm:$0xff] %v4046_v17  ;;  %2916 = vmatprep.subr.mxu1 %v4022_v13  ;;  %v4053_v18 = vld [vmem:[%s5992_s2 + $0x58] sm:$0xff]  ;;  %2882 = vmatpush3.msra.mxu0 %v4029_v14  ;;  %6331 = vst [vmem:[#allocation24_spill] sm:$0xff] %v4065_v20  ;;  %v4070_v21 = vld [vmem:[%s5992_s2 + $0x1d0] sm:$0xff] }
   0xb   :  { %6329 = vst [vmem:[#allocation22_spill] sm:$0xff] %v4053_v18  ;;  %v4058_v19 = vld [vmem:[%s5992_s2 + $0x158] sm:$0xff]  ;;  %2917 = vmatpush3.msra.mxu1 %v4034_v15  ;;  %6332 = vst [vmem:[#allocation25_spill] sm:$0xff] %v4070_v21  ;;  %2883 = vmatprep.subr.mxu0 %v4041_v16  ;;  %v4077_v22 = vld [vmem:[%s5992_s2 + $0x50] sm:$0xff] }
   0xc   :  { %6330 = vst [vmem:[#allocation23_spill] sm:$0xff] %v4058_v19  ;;  %2918 = vmatprep.subr.mxu1 %v4046_v17  ;;  %6333 = vst [vmem:[#allocation26_spill] sm:$0xff] %v4077_v22  ;;  %v4082_v23 = vld [vmem:[%s5992_s2 + $0x150] sm:$0xff]  ;;  %2884 = vmatpush3.msra.mxu0 %v4053_v18  ;;  %v4089_v24 = vld [vmem:[%s5992_s2 + $0xc8] sm:$0xff] }
   0xd   :  { %6334 = vst [vmem:[#allocation27_spill] sm:$0xff] %v4082_v23  ;;  %2919 = vmatpush3.msra.mxu1 %v4058_v19  ;;  %6335 = vst [vmem:[#allocation28_spill] sm:$0xff] %v4089_v24  ;;  %v4094_v25 = vld [vmem:[%s5992_s2 + $0x1c8] sm:$0xff]  ;;  %2885 = vmatprep.subr.mxu0 %v4065_v20  ;;  %v4113_v28 = vld [vmem:[%s5992_s2 + $0xc0] sm:$0xff] }
   0xe   :  { %6336 = vst [vmem:[#allocation29_spill] sm:$0xff] %v4094_v25  ;;  %2920 = vmatprep.subr.mxu1 %v4070_v21  ;;  %v4101_v26 = vld [vmem:[%s5992_s2 + $0x48] sm:$0xff]  ;;  %2886 = vmatpush3.msra.mxu0 %v4077_v22  ;;  %6339 = vst [vmem:[#allocation32_spill] sm:$0xff] %v4113_v28  ;;  %v4118_v29 = vld [vmem:[%s5992_s2 + $0x1c0] sm:$0xff] }
   0xf   :  { %6337 = vst [vmem:[#allocation30_spill] sm:$0xff] %v4101_v26  ;;  %v4106_v27 = vld [vmem:[%s5992_s2 + $0x148] sm:$0xff]  ;;  %2921 = vmatpush3.msra.mxu1 %v4082_v23  ;;  %6340 = vst [vmem:[#allocation33_spill] sm:$0xff] %v4118_v29  ;;  %2887 = vmatprep.subr.mxu0 %v4089_v24  ;;  %v4125_v33 = vld [vmem:[%s5992_s2 + $0x40] sm:$0xff] }
  0x10   :  { %6338 = vst [vmem:[#allocation31_spill] sm:$0xff] %v4106_v27  ;;  %2922 = vmatprep.subr.mxu1 %v4094_v25  ;;  %6341 = vst [vmem:[#allocation34_spill] sm:$0xff] %v4125_v33  ;;  %v4130_v34 = vld [vmem:[%s5992_s2 + $0x140] sm:$0xff]  ;;  %2888 = vmatpush3.msra.mxu0 %v4101_v26  ;;  %v4137_v35 = vld [vmem:[%s5992_s2 + $0xb8] sm:$0xff] }
  0x11   :  { %6342 = vst [vmem:[#allocation35_spill] sm:$0xff] %v4130_v34  ;;  %2923 = vmatpush3.msra.mxu1 %v4106_v27  ;;  %6343 = vst [vmem:[#allocation36_spill] sm:$0xff] %v4137_v35  ;;  %v4142_v36 = vld [vmem:[%s5992_s2 + $0x1b8] sm:$0xff]  ;;  %2889 = vmatprep.subr.mxu0 %v4113_v28  ;;  %v4161_v39 = vld [vmem:[%s5992_s2 + $0xb0] sm:$0xff] }
  0x12   :  { %6344 = vst [vmem:[#allocation37_spill] sm:$0xff] %v4142_v36  ;;  %2924 = vmatprep.subr.mxu1 %v4118_v29  ;;  %v4149_v37 = vld [vmem:[%s5992_s2 + $0x38] sm:$0xff]  ;;  %2890 = vmatpush3.msra.mxu0 %v4125_v33  ;;  %6347 = vst [vmem:[#allocation40_spill] sm:$0xff] %v4161_v39  ;;  %v4166_v40 = vld [vmem:[%s5992_s2 + $0x1b0] sm:$0xff] }
  0x13   :  { %6345 = vst [vmem:[#allocation38_spill] sm:$0xff] %v4149_v37  ;;  %v4154_v38 = vld [vmem:[%s5992_s2 + $0x138] sm:$0xff]  ;;  %2925 = vmatpush3.msra.mxu1 %v4130_v34  ;;  %6348 = vst [vmem:[#allocation41_spill] sm:$0xff] %v4166_v40  ;;  %2891 = vmatprep.subr.mxu0 %v4137_v35  ;;  %v4173_v43 = vld [vmem:[%s5992_s2 + $0x30] sm:$0xff] }
  0x14   :  { %6346 = vst [vmem:[#allocation39_spill] sm:$0xff] %v4154_v38  ;;  %2926 = vmatprep.subr.mxu1 %v4142_v36  ;;  %6349 = vst [vmem:[#allocation42_spill] sm:$0xff] %v4173_v43  ;;  %v4178_v44 = vld [vmem:[%s5992_s2 + $0x130] sm:$0xff]  ;;  %2892 = vmatpush3.msra.mxu0 %v4149_v37  ;;  %v4185_v45 = vld [vmem:[%s5992_s2 + $0xa8] sm:$0xff] }
  0x15   :  { %6350 = vst [vmem:[#allocation43_spill] sm:$0xff] %v4178_v44  ;;  %2927 = vmatpush3.msra.mxu1 %v4154_v38  ;;  %6351 = vst [vmem:[#allocation44_spill] sm:$0xff] %v4185_v45  ;;  %v4190_v46 = vld [vmem:[%s5992_s2 + $0x1a8] sm:$0xff]  ;;  %2893 = vmatprep.subr.mxu0 %v4161_v39  ;;  %v4209_v49 = vld [vmem:[%s5992_s2 + $0xa0] sm:$0xff] }
  0x16   :  { %6352 = vst [vmem:[#allocation45_spill] sm:$0xff] %v4190_v46  ;;  %2928 = vmatprep.subr.mxu1 %v4166_v40  ;;  %v4197_v47 = vld [vmem:[%s5992_s2 + $0x28] sm:$0xff]  ;;  %2894 = vmatpush3.msra.mxu0 %v4173_v43  ;;  %6355 = vst [vmem:[#allocation48_spill] sm:$0xff] %v4209_v49  ;;  %v4214_v50 = vld [vmem:[%s5992_s2 + $0x1a0] sm:$0xff] }
  0x17   :  { %6353 = vst [vmem:[#allocation46_spill] sm:$0xff] %v4197_v47  ;;  %v4202_v48 = vld [vmem:[%s5992_s2 + $0x128] sm:$0xff]  ;;  %2929 = vmatpush3.msra.mxu1 %v4178_v44  ;;  %6356 = vst [vmem:[#allocation49_spill] sm:$0xff] %v4214_v50  ;;  %v4219_v51 = vld [vmem:[%s5992_s2 + $0x20] sm:$0xff]  ;;  %2895 = vmatprep.subr.mxu0 %v4185_v45 }
  0x18   :  { %6354 = vst [vmem:[#allocation47_spill] sm:$0xff] %v4202_v48  ;;  %2930 = vmatprep.subr.mxu1 %v4190_v46  ;;  %v4228_v53 = vld [vmem:[%s5992_s2 + $0x120] sm:$0xff]  ;;  %2896 = vmatpush3.msra.mxu0 %v4197_v47  ;;  %v4243_v56 = vld [vmem:[%s5992_s2 + $0x98] sm:$0xff]  ;;  %v4266_v60 = vld [vmem:[%s5992_s2 + $0x90] sm:$0xff] }
  0x19   :  { %6357 = vst [vmem:[#allocation50_spill] sm:$0xff] %v4228_v53  ;;  %v4233_v54 = vld [vmem:[%s5991_s1] sm:$0xff]  ;;  %2931 = vmatpush3.msra.mxu1 %v4202_v48  ;;  %6359 = vst [vmem:[#allocation52_spill] sm:$0xff] %v4243_v56  ;;  %v4248_v57 = vld [vmem:[%s5992_s2 + $0x198] sm:$0xff]  ;;  %2897 = vmatprep.subr.mxu0 %v4209_v49 }
  0x1a   :  { %6358 = vst [vmem:[#allocation51_spill] sm:$0xff] %v4233_v54  ;;  %v115_v55 = vld [vmem:[%s5990_s0] sm:$0xff]  ;;  %6360 = vst [vmem:[#allocation53_spill] sm:$0xff] %v4248_v57  ;;  %2932 = vmatprep.subr.mxu1 %v4214_v50  ;;  %v4256_v58 = vld [vmem:[%s5992_s2 + $0x18] sm:$0xff]  ;;  %2898 = vmatpush3.msra.mxu0 %v4219_v51  ;;  %v6368_v50 = vmov 0.0  }
  0x1b   :  { %vm131_vm0 = vcmp.le.f32.partialorder %v115_v55, %v4233_v54  ;;  %v4261_v59 = vld [vmem:[%s5992_s2 + $0x118] sm:$0xff]  ;;  %2933 = vmatpush3.msra.mxu1 %v4228_v53  ;;  %v4274_v63 = vld [vmem:[%s5992_s2 + $0x190] sm:$0xff]  ;;  %v4280_v32 = vld [vmem:[%s5991_s1 + $0x8] sm:$0x3f]  ;;  %2899 = vmatprep.subr.mxu0 %v4243_v56 }
  0x1c   :  { %6361 = vst [vmem:[#allocation54_spill] sm:$0xff] %v4261_v59  ;;  %v2843_v62 = vsel %vm131_vm0, 1.0, %v5994_v61  ;;  %6362 = vst [vmem:[#allocation55_spill] sm:$0xff] %v4274_v63  ;;  %v116_v41 = vld [vmem:[%s5990_s0 + $0x8] sm:$0x3f]  ;;  %2934 = vmatprep.subr.mxu1 %v4248_v57  ;;  %v4290_v42 = vld [vmem:[%s5992_s2 + $0x10] sm:$0xff]  ;;  %2900 = vmatpush3.msra.mxu0 %v4256_v58 }
  0x1d   :  { %v188_v30 = vrot.slane %v2843_v62, %v4221_v52  ;;  %v181_v31 = vcombine.high %v2843_v62, %v2843_v62  ;;  %6363 = vst [vmem:[#allocation56_spill] sm:$0xff] %v4280_v32  ;;  %v4295_v55 = vld [vmem:[%s5992_s2 + $0x110] sm:$0xff]  ;;  %2935 = vmatpush3.msra.mxu1 %v4261_v59  ;;  %v4302_v62 = vld [vmem:[%s5992_s2 + $0x88] sm:$0xff]  ;;  %vm132_vm1 = vcmp.le.f32.partialorder %v116_v41, %v4280_v32  ;;  %v4333_v41 = vld [vmem:[%s5992_s2 + $0x180] sm:$0xff] }
  0x1e   :  { %6364 = vst [vmem:[#allocation57_spill] sm:$0xff] %v4295_v55  ;;  %v4307_v61 = vld [vmem:[%s5992_s2 + $0x188] sm:$0xff]  ;;  %2901 = vmatprep.subr.mxu0 %v4266_v60  ;;  %2936 = vmatprep.subr.mxu1 %v4274_v63  ;;  %6367 = vst [vmem:[#allocation60_spill] sm:$0xff] %v4333_v41  ;;  %v4340_v32 = vld [vmem:[%s5992_s2] sm:$0xff]  ;;  %v4343_v48 = vsel %vm132_vm1, 1.0, %v6368_v50 }
  0x1f   :  { %6365 = vst [vmem:[#allocation58_spill] sm:$0xff] %v4307_v61  ;;  %v195_v57 = vrot.slane %v181_v31, %v4221_v52  ;;  %v4316_v59 = vld [vmem:[%s5992_s2 + $0x8] sm:$0xff]  ;;  %2902 = vmatpush3.msra.mxu0 %v4290_v42  ;;  %2937 = vmatpush3.msra.mxu1 %v4295_v55  ;;  %v4328_v31 = vld [vmem:[%s5992_s2 + $0x80] sm:$0xff]  ;;  %v196_v63 = vcombine.high %v188_v30, %v188_v30  ;;  %v4366_v44 = vld [vmem:[%s5992_s2 + $0x278] sm:$0xff] }
  0x20   :  { %v4321_v53 = vld [vmem:[%s5992_s2 + $0x108] sm:$0xff]  ;;  %2903 = vmatprep.subr.mxu0 %v4302_v62  ;;  %2938 = vmatprep.subr.mxu1 %v4307_v61  ;;  %v4350_v46 = vld [vmem:[%s5992_s2 + $0x100] sm:$0xff]  ;;  %v4358_v61 = vld [vmem:[%s5992_s2 + $0x2f8] sm:$0xff] }
  0x21   :  { %6366 = vst [vmem:[#allocation59_spill] sm:$0xff] %v4321_v53  ;;  %v197_v55 = vcombine.high %v195_v57, %v195_v57  ;;  %2904 = vmatpush3.msra.mxu0 %v4316_v59  ;;  %2939 = vmatpush3.msra.mxu1 %v4321_v53  ;;  %6369 = vst [vmem:[#allocation61_spill] sm:$0xff] %v4350_v46  ;;  %v198_v53 = vcombine.high %v4343_v48, %v4343_v48 }
  0x22   :  { %2905 = vmatprep.subr.mxu0 %v4328_v31  ;;  %2940 = vmatprep.subr.mxu1 %v4333_v41  ;;  %v4376_v41 = vld [vmem:[%s5992_s2 + $0x2f0] sm:$0xff] }
  0x23   :  { %2906 = vmatpush3.msra.mxu0 %v4340_v32  ;;  %287 = vmatprep.mubr.f32.mxu0 %v196_v63  ;;  %v4371_v63 = vld [vmem:[%s5992_s2 + $0x308] sm:$0xff] }
  0x24   :  { %2941 = vmatpush3.msra.mxu1 %v4350_v46  ;;  %357 = vmatprep.mubr.f32.mxu1 %v197_v55  ;;  %6370 = vst [vmem:[#allocation62_spill] sm:$0xff] %v4371_v63  ;;  %v4383_v55 = vld [vmem:[%s5992_s2 + $0x270] sm:$0xff]  ;;  %v4388_v46 = vld [vmem:[%s5992_s2 + $0x300] sm:$0xff] }
  0x25   :  { %288 = vmatmul.mubr.f32.vlgmr.msra.gmra.mxu0 %v188_v30  ;;  %358 = vmatmul.mubr.f32.vlgmr.msra.gmra.mxu1 %v195_v57  ;;  %6371 = vst [vmem:[#allocation63_spill] sm:$0xff] %v4388_v46 }
  0x26   :  { %2945 = vmatprep.subr.mxu0 %v4358_v61  ;;  %3739 = vmatprep.subr.mxu1 %v6368_v50 }
  0x27   :  { %8 = vsyncpa [#allocation3], 0  ;;  %2946 = vmatpush3.msra.mxu0 %v4366_v44  ;;  %3740 = vmatpush3.msra.mxu1 %v4371_v63  ;;  %v4395_v57 = vld [vmem:[%s5992_s2 + $0x2e8] sm:$0xff]  ;;  %v212_v30 = vrot.slane %v198_v53, %v4221_v52  ;;  %vm220_vm2 = vcmask 130048   ;;  %vm3924_vm3 = vmmov 0   ;;  %v4413_v53 = vld [vmem:[%s5992_s2 + $0x2e0] sm:$0xff] }
  0x28   :  { %2947 = vmatprep.subr.mxu0 %v4376_v41  ;;  %3741 = vmatprep.subr.mxu1 %v6368_v50  ;;  %v4405_v63 = vld [vmem:[%s5992_s2 + $0x268] sm:$0xff]  ;;  %v4427_v40 = vld [vmem:[%s5992_s2 + $0x2d8] sm:$0xff] }
  0x29   :  { %2948 = vmatpush3.msra.mxu0 %v4383_v55  ;;  %3742 = vmatpush3.msra.mxu1 %v4388_v46  ;;  %v4420_v46 = vld [vmem:[%s5992_s2 + $0x260] sm:$0xff]  ;;  %6373 = vst [vmem:[#allocation65_spill] sm:$0xff] %v4427_v40 }
  0x2a   :  { %3743 = vmatprep.mubr.msk.f32.mxu1 %vm3924_vm3, %v6368_v50  ;;  %2949 = vmatprep.subr.mxu0 %v4395_v57  ;;  %6372 = vst [vmem:[#allocation64_spill] sm:$0xff] %v4420_v46 }
  0x2b   :  { %3744 = vmatmul.mubr.msk.f32.vlgmr.msra.gmra.mxu1 %vm220_vm2, %v212_v30  ;;  %2983 = vmatprep.subr.mxu1 %v3949_v0  ;;  %v4434_v30 = vld [vmem:[%s5992_s2 + $0x258] sm:$0xff]  ;;  %v117_v0 = vld [vmem:[%s5990_s0 + $0xe] sm:$0xff] }
  0x2c   :  { %2950 = vmatpush3.msra.mxu0 %v4405_v63  ;;  %2984 = vmatpush3.msra.mxu1 %v3959_v2  ;;  %6374 = vst [vmem:[#allocation66_spill] sm:$0xff] %v4434_v30  ;;  %v4441_v2 = vld [vmem:[%s5992_s2 + $0x2d0] sm:$0xff]  ;;  %vm133_vm4 = vcmp.le.f32.partialorder %v117_v0, %v4233_v54 }
  0x2d   :  { %2951 = vmatprep.subr.mxu0 %v4413_v53  ;;  %2985 = vmatprep.subr.mxu1 %v3971_v4  ;;  %6375 = vst [vmem:[#allocation67_spill] sm:$0xff] %v4441_v2  ;;  %v4448_v4 = vld [vmem:[%s5992_s2 + $0x250] sm:$0xff] }
  0x2e   :  { %2952 = vmatpush3.msra.mxu0 %v4420_v46  ;;  %2986 = vmatpush3.msra.mxu1 %v3983_v6  ;;  %6376 = vst [vmem:[#allocation68_spill] sm:$0xff] %v4448_v4  ;;  %v4455_v6 = vld [vmem:[%s5992_s2 + $0x2c8] sm:$0xff]  ;;  %v4566_v0 = vld [vmem:[%s5992_s2 + $0x210] sm:$0xff] }
  0x2f   :  { %2953 = vmatprep.subr.mxu0 %v4427_v40  ;;  %2987 = vmatprep.subr.mxu1 %v3993_v8  ;;  %6377 = vst [vmem:[#allocation69_spill] sm:$0xff] %v4455_v6  ;;  %v4462_v8 = vld [vmem:[%s5992_s2 + $0x248] sm:$0xff] }
  0x30   :  { %2954 = vmatpush3.msra.mxu0 %v4434_v30  ;;  %2988 = vmatpush3.msra.mxu1 %v4005_v10  ;;  %6378 = vst [vmem:[#allocation70_spill] sm:$0xff] %v4462_v8  ;;  %v4469_v10 = vld [vmem:[%s5992_s2 + $0x2c0] sm:$0xff] }
  0x31   :  { %2955 = vmatprep.subr.mxu0 %v4441_v2  ;;  %2989 = vmatprep.subr.mxu1 %v4017_v12  ;;  %6379 = vst [vmem:[#allocation71_spill] sm:$0xff] %v4469_v10  ;;  %v4476_v12 = vld [vmem:[%s5992_s2 + $0x240] sm:$0xff] }
  0x32   :  { %2956 = vmatpush3.msra.mxu0 %v4448_v4  ;;  %2990 = vmatpush3.msra.mxu1 %v4029_v14  ;;  %6380 = vst [vmem:[#allocation72_spill] sm:$0xff] %v4476_v12  ;;  %v4483_v14 = vld [vmem:[%s5992_s2 + $0x2b8] sm:$0xff] }
  0x33   :  { %2957 = vmatprep.subr.mxu0 %v4455_v6  ;;  %2991 = vmatprep.subr.mxu1 %v4041_v16  ;;  %6381 = vst [vmem:[#allocation73_spill] sm:$0xff] %v4483_v14  ;;  %v4490_v16 = vld [vmem:[%s5992_s2 + $0x238] sm:$0xff] }
  0x34   :  { %2958 = vmatpush3.msra.mxu0 %v4462_v8  ;;  %2992 = vmatpush3.msra.mxu1 %v4053_v18  ;;  %6382 = vst [vmem:[#allocation74_spill] sm:$0xff] %v4490_v16  ;;  %v4497_v18 = vld [vmem:[%s5992_s2 + $0x2b0] sm:$0xff] }
  0x35   :  { %2959 = vmatprep.subr.mxu0 %v4469_v10  ;;  %2993 = vmatprep.subr.mxu1 %v4065_v20  ;;  %6383 = vst [vmem:[#allocation75_spill] sm:$0xff] %v4497_v18  ;;  %v4504_v20 = vld [vmem:[%s5992_s2 + $0x230] sm:$0xff] }
  0x36   :  { %2960 = vmatpush3.msra.mxu0 %v4476_v12  ;;  %2994 = vmatpush3.msra.mxu1 %v4077_v22  ;;  %6384 = vst [vmem:[#allocation76_spill] sm:$0xff] %v4504_v20  ;;  %v4511_v22 = vld [vmem:[%s5992_s2 + $0x2a8] sm:$0xff] }
  0x37   :  { %2961 = vmatprep.subr.mxu0 %v4483_v14  ;;  %2995 = vmatprep.subr.mxu1 %v4089_v24  ;;  %6385 = vst [vmem:[#allocation77_spill] sm:$0xff] %v4511_v22  ;;  %v4518_v24 = vld [vmem:[%s5992_s2 + $0x228] sm:$0xff] }
  0x38   :  { %2962 = vmatpush3.msra.mxu0 %v4490_v16  ;;  %2996 = vmatpush3.msra.mxu1 %v4101_v26  ;;  %6386 = vst [vmem:[#allocation78_spill] sm:$0xff] %v4518_v24  ;;  %v4525_v26 = vld [vmem:[%s5992_s2 + $0x2a0] sm:$0xff] }
  0x39   :  { %2963 = vmatprep.subr.mxu0 %v4497_v18  ;;  %2997 = vmatprep.subr.mxu1 %v4113_v28  ;;  %6387 = vst [vmem:[#allocation79_spill] sm:$0xff] %v4525_v26  ;;  %v4535_v28 = vld [vmem:[%s5992_s2 + $0x220] sm:$0xff] }
  0x3a   :  { %2964 = vmatpush3.msra.mxu0 %v4504_v20  ;;  %2998 = vmatpush3.msra.mxu1 %v4125_v33  ;;  %6388 = vst [vmem:[#allocation80_spill] sm:$0xff] %v4535_v28  ;;  %v4542_v33 = vld [vmem:[%s5992_s2 + $0x298] sm:$0xff] }
  0x3b   :  { %2965 = vmatprep.subr.mxu0 %v4511_v22  ;;  %2999 = vmatprep.subr.mxu1 %v4137_v35  ;;  %6389 = vst [vmem:[#allocation81_spill] sm:$0xff] %v4542_v33  ;;  %v4549_v35 = vld [vmem:[%s5992_s2 + $0x218] sm:$0xff] }
  0x3c   :  { %2966 = vmatpush3.msra.mxu0 %v4518_v24  ;;  %3000 = vmatpush3.msra.mxu1 %v4149_v37  ;;  %v4557_v37 = vld [vmem:[%s5992_s2 + $0x290] sm:$0xff] }
  0x3d   :  { %2967 = vmatprep.subr.mxu0 %v4525_v26  ;;  %3001 = vmatprep.subr.mxu1 %v4161_v39  ;;  %6390 = vst [vmem:[#allocation82_spill] sm:$0xff] %v4557_v37  ;;  %v205_v26 = vrot.slane %v4343_v48, %v4221_v52  ;;  %v4576_v48 = vsel %vm133_vm4, 1.0, %v6368_v50 }
  0x3e   :  { %2968 = vmatpush3.msra.mxu0 %v4535_v28  ;;  %3002 = vmatpush3.msra.mxu1 %v4173_v43  ;;  %v4573_v43 = vld [vmem:[%s5992_s2 + $0x288] sm:$0xff]  ;;  %v512_v54 = vrot.slane %v4576_v48, %v4221_v52 }
  0x3f   :  { %2969 = vmatprep.subr.mxu0 %v4542_v33  ;;  %3003 = vmatprep.subr.mxu1 %v4185_v45  ;;  %v4583_v45 = vld [vmem:[%s5992_s2 + $0x208] sm:$0xff]  ;;  %v213_v39 = vcombine.high %v205_v26, %v205_v26 }
  0x40   :  { %2970 = vmatpush3.msra.mxu0 %v4549_v35  ;;  %3004 = vmatpush3.msra.mxu1 %v4197_v47  ;;  %v4590_v47 = vld [vmem:[%s5992_s2 + $0x280] sm:$0xff] }
  0x41   :  { %2971 = vmatprep.subr.mxu0 %v4557_v37  ;;  %3005 = vmatprep.subr.mxu1 %v4209_v49  ;;  %6391 = vst [vmem:[#allocation83_spill] sm:$0xff] %v4590_v47  ;;  %v4597_v49 = vld [vmem:[%s5992_s2 + $0x200] sm:$0xff] }
  0x42   :  { %2972 = vmatpush3.msra.mxu0 %v4566_v0  ;;  %3006 = vmatpush3.msra.mxu1 %v4219_v51  ;;  %6392 = vst [vmem:[#allocation84_spill] sm:$0xff] %v4597_v49 }
  0x43   :  { %2973 = vmatprep.subr.mxu0 %v4573_v43  ;;  %3007 = vmatprep.subr.mxu1 %v4243_v56  ;;  %v520_v56 = vcombine.high %v512_v54, %v512_v54 }
  0x44   :  { %2974 = vmatpush3.msra.mxu0 %v4583_v45  ;;  %3008 = vmatpush3.msra.mxu1 %v4256_v58 }
  0x45   :  { %2975 = vmatprep.subr.mxu0 %v4590_v47  ;;  %3009 = vmatprep.subr.mxu1 %v4266_v60 }
  0x46   :  { %2976 = vmatpush3.msra.mxu0 %v4597_v49  ;;  %427 = vmatprep.mubr.f32.mxu0 %v213_v39  ;;  %v6394_v39 = vld [vmem:[#allocation43_spill] sm:$0xff] }
  0x47   :  { %3010 = vmatpush3.msra.mxu1 %v4290_v42  ;;  %428 = vmatmul.mubr.f32.vlgmr.msra.gmra.mxu0 %v205_v26  ;;  %v6393_v26 = vld [vmem:[#allocation41_spill] sm:$0xff] }
  0x48   :  { %3011 = vmatprep.subr.mxu1 %v4302_v62  ;;  %3018 = vmatprep.subr.mxu0 %v3954_v1 }
  0x49   :  { %3012 = vmatpush3.msra.mxu1 %v4316_v59  ;;  %3019 = vmatpush3.msra.mxu0 %v3966_v3 }
  0x4a   :  { %3013 = vmatprep.subr.mxu1 %v4328_v31  ;;  %3020 = vmatprep.subr.mxu0 %v3976_v5 }
  0x4b   :  { %3014 = vmatpush3.msra.mxu1 %v4340_v32  ;;  %610 = vmatprep.mubr.f32.mxu1 %v520_v56  ;;  %v118_v56 = vld [vmem:[%s5990_s0 + $0x16] sm:$0x3f] }
  0x4c   :  { %3021 = vmatpush3.msra.mxu0 %v3988_v7  ;;  %611 = vmatmul.mubr.f32.vlgmr.msra.gmra.mxu1 %v512_v54  ;;  %v505_v54 = vcombine.high %v4576_v48, %v4576_v48 }
  0x4d   :  { %3022 = vmatprep.subr.mxu0 %v4000_v9  ;;  %3053 = vmatprep.subr.mxu1 %v4358_v61 }
  0x4e   :  { %3023 = vmatpush3.msra.mxu0 %v4010_v11  ;;  %3054 = vmatpush3.msra.mxu1 %v4366_v44  ;;  %v519_v48 = vrot.slane %v505_v54, %v4221_v52  ;;  %v6405_v54 = vld [vmem:[#allocation58_spill] sm:$0xff] }
  0x4f   :  { %3024 = vmatprep.subr.mxu0 %v4022_v13  ;;  %3055 = vmatprep.subr.mxu1 %v4376_v41 }
  0x50   :  { %3025 = vmatpush3.msra.mxu0 %v4034_v15  ;;  %3056 = vmatpush3.msra.mxu1 %v4383_v55 }
  0x51   :  { %3026 = vmatprep.subr.mxu0 %v4046_v17  ;;  %3057 = vmatprep.subr.mxu1 %v4395_v57 }
  0x52   :  { %3027 = vmatpush3.msra.mxu0 %v4058_v19  ;;  %3058 = vmatpush3.msra.mxu1 %v4405_v63 }
  0x53   :  { %3028 = vmatprep.subr.mxu0 %v4070_v21  ;;  %3059 = vmatprep.subr.mxu1 %v4413_v53 }
  0x54   :  { %3029 = vmatpush3.msra.mxu0 %v4082_v23  ;;  %3060 = vmatpush3.msra.mxu1 %v4420_v46 }
  0x55   :  { %3030 = vmatprep.subr.mxu0 %v4094_v25  ;;  %3061 = vmatprep.subr.mxu1 %v4427_v40  ;;  %v6406_v40 = vld [vmem:[#allocation59_spill] sm:$0xff] }
  0x56   :  { %3031 = vmatpush3.msra.mxu0 %v4106_v27  ;;  %3062 = vmatpush3.msra.mxu1 %v4434_v30  ;;  %v6402_v30 = vld [vmem:[#allocation55_spill] sm:$0xff] }
  0x57   :  { %3032 = vmatprep.subr.mxu0 %v4118_v29  ;;  %3063 = vmatprep.subr.mxu1 %v4441_v2  ;;  %v6400_v2 = vld [vmem:[#allocation53_spill] sm:$0xff] }
  0x58   :  { %3033 = vmatpush3.msra.mxu0 %v4130_v34  ;;  %3064 = vmatpush3.msra.mxu1 %v4448_v4  ;;  %v6399_v4 = vld [vmem:[#allocation50_spill] sm:$0xff] }
  0x59   :  { %3034 = vmatprep.subr.mxu0 %v4142_v36  ;;  %3065 = vmatprep.subr.mxu1 %v4455_v6  ;;  %v6395_v6 = vld [vmem:[#allocation45_spill] sm:$0xff] }
  0x5a   :  { %3035 = vmatpush3.msra.mxu0 %v4154_v38  ;;  %3066 = vmatpush3.msra.mxu1 %v4462_v8  ;;  %v6396_v8 = vld [vmem:[#allocation47_spill] sm:$0xff] }
  0x5b   :  { %3036 = vmatprep.subr.mxu0 %v6393_v26  ;;  %3067 = vmatprep.subr.mxu1 %v4469_v10  ;;  %v6397_v10 = vld [vmem:[#allocation49_spill] sm:$0xff] }
  0x5c   :  { %3037 = vmatpush3.msra.mxu0 %v6394_v39  ;;  %3068 = vmatpush3.msra.mxu1 %v4476_v12  ;;  %v6398_v12 = vld [vmem:[#allocation56_spill] sm:$0xff] }
  0x5d   :  { %3038 = vmatprep.subr.mxu0 %v6395_v6  ;;  %3069 = vmatprep.subr.mxu1 %v4483_v14  ;;  %vm134_vm5 = vcmp.le.f32.partialorder %v118_v56, %v6398_v12  ;;  %v6401_v14 = vld [vmem:[#allocation54_spill] sm:$0xff]  ;;  %v6404_v56 = vld [vmem:[#allocation57_spill] sm:$0xff] }
  0x5e   :  { %3039 = vmatpush3.msra.mxu0 %v6396_v8  ;;  %3070 = vmatpush3.msra.mxu1 %v4490_v16  ;;  %v2846_v16 = vsel %vm134_vm5, 1.0, %v6368_v50 }
  0x5f   :  { %3040 = vmatprep.subr.mxu0 %v6397_v10  ;;  %3071 = vmatprep.subr.mxu1 %v4497_v18  ;;  %v6403_v18 = vld [vmem:[#allocation79_spill] sm:$0xff]  ;;  %v522_v46 = vcombine.high %v2846_v16, %v2846_v16 }
  0x60   :  { %3041 = vmatpush3.msra.mxu0 %v6399_v4  ;;  %3072 = vmatpush3.msra.mxu1 %v4504_v20  ;;  %v521_v20 = vcombine.high %v519_v48, %v519_v48 }
  0x61   :  { %3042 = vmatprep.subr.mxu0 %v6400_v2  ;;  %3073 = vmatprep.subr.mxu1 %v4511_v22  ;;  %v529_v22 = vrot.slane %v2846_v16, %v4221_v52  ;;  %v6410_v16 = vld [vmem:[#allocation63_spill] sm:$0xff] }
  0x62   :  { %3043 = vmatpush3.msra.mxu0 %v6401_v14  ;;  %3074 = vmatpush3.msra.mxu1 %v4518_v24  ;;  %v6407_v24 = vld [vmem:[#allocation60_spill] sm:$0xff] }
  0x63   :  { %3044 = vmatprep.subr.mxu0 %v6402_v30  ;;  %3075 = vmatprep.subr.mxu1 %v6403_v18  ;;  %v6408_v18 = vld [vmem:[#allocation61_spill] sm:$0xff] }
  0x64   :  { %3045 = vmatpush3.msra.mxu0 %v6404_v56  ;;  %3076 = vmatpush3.msra.mxu1 %v4535_v28  ;;  %v537_v28 = vcombine.high %v529_v22, %v529_v22 }
  0x65   :  { %3046 = vmatprep.subr.mxu0 %v6405_v54  ;;  %3077 = vmatprep.subr.mxu1 %v4542_v33  ;;  %v6409_v33 = vld [vmem:[#allocation62_spill] sm:$0xff] }
  0x66   :  { %3047 = vmatpush3.msra.mxu0 %v6406_v40  ;;  %3078 = vmatpush3.msra.mxu1 %v4549_v35 }
  0x67   :  { %3048 = vmatprep.subr.mxu0 %v6407_v24  ;;  %3079 = vmatprep.subr.mxu1 %v4557_v37  ;;  %v536_v37 = vrot.slane %v522_v46, %v4221_v52  ;;  %v6413_v46 = vld [vmem:[#allocation8_spill] sm:$0xff] }
  0x68   :  { %3049 = vmatpush3.msra.mxu0 %v6408_v18  ;;  %680 = vmatprep.mubr.f32.mxu0 %v521_v20  ;;  %v6411_v20 = vld [vmem:[#allocation5_spill] sm:$0xff] }
  0x69   :  { %3080 = vmatpush3.msra.mxu1 %v4566_v0  ;;  %681 = vmatmul.mubr.f32.vlgmr.msra.gmra.mxu0 %v519_v48  ;;  %v6412_v48 = vld [vmem:[#allocation6_spill] sm:$0xff] }
  0x6a   :  { %3081 = vmatprep.subr.mxu1 %v4573_v43  ;;  %3746 = vmatprep.subr.mxu0 %v6368_v50 }
  0x6b   :  { %3082 = vmatpush3.msra.mxu1 %v4583_v45  ;;  %3747 = vmatpush3.msra.mxu0 %v6409_v33 }
  0x6c   :  { %3083 = vmatprep.subr.mxu1 %v4590_v47  ;;  %3748 = vmatprep.subr.mxu0 %v6368_v50  ;;  %v6429_v47 = vld [vmem:[#allocation38_spill] sm:$0xff] }
  0x6d   :  { %3084 = vmatpush3.msra.mxu1 %v4597_v49  ;;  %750 = vmatprep.mubr.f32.mxu1 %v537_v28  ;;  %v6414_v28 = vld [vmem:[#allocation10_spill] sm:$0xff] }
  0x6e   :  { %3749 = vmatpush3.msra.mxu0 %v6410_v16  ;;  %751 = vmatmul.mubr.f32.vlgmr.msra.gmra.mxu1 %v529_v22  ;;  %v6415_v22 = vld [vmem:[#allocation12_spill] sm:$0xff]  ;;  %v6416_v49 = vld [vmem:[#allocation14_spill] sm:$0xff] }
  0x6f   :  { %3750 = vmatprep.mubr.msk.f32.mxu0 %vm3924_vm3, %v6368_v50  ;;  %3091 = vmatprep.subr.mxu0 %v6411_v20 }
  0x70   :  { %3126 = vmatprep.subr.mxu1 %v3954_v1  ;;  %3751 = vmatmul.mubr.msk.f32.vlgmr.msra.gmra.mxu0 %vm220_vm2, %v536_v37  ;;  %v6417_v1 = vld [vmem:[#allocation16_spill] sm:$0xff]  ;;  %v6418_v37 = vld [vmem:[#allocation18_spill] sm:$0xff] }
  0x71   :  { %3092 = vmatpush3.msra.mxu0 %v6412_v48  ;;  %3127 = vmatpush3.msra.mxu1 %v3966_v3  ;;  %v6427_v3 = vld [vmem:[#allocation34_spill] sm:$0xff] }
  0x72   :  { %3093 = vmatprep.subr.mxu0 %v6413_v46  ;;  %3128 = vmatprep.subr.mxu1 %v3976_v5  ;;  %v6419_v5 = vld [vmem:[#allocation20_spill] sm:$0xff] }
  0x73   :  { %3094 = vmatpush3.msra.mxu0 %v6414_v28  ;;  %3129 = vmatpush3.msra.mxu1 %v3988_v7  ;;  %v6420_v7 = vld [vmem:[#allocation22_spill] sm:$0xff] }
  0x74   :  { %3095 = vmatprep.subr.mxu0 %v6415_v22  ;;  %3130 = vmatprep.subr.mxu1 %v4000_v9  ;;  %v6421_v9 = vld [vmem:[#allocation24_spill] sm:$0xff] }
  0x75   :  { %3096 = vmatpush3.msra.mxu0 %v6416_v49  ;;  %3131 = vmatpush3.msra.mxu1 %v4010_v11  ;;  %v6422_v11 = vld [vmem:[#allocation26_spill] sm:$0xff] }
  0x76   :  { %3097 = vmatprep.subr.mxu0 %v6417_v1  ;;  %3132 = vmatprep.subr.mxu1 %v4022_v13  ;;  %v6423_v13 = vld [vmem:[#allocation28_spill] sm:$0xff] }
  0x77   :  { %3098 = vmatpush3.msra.mxu0 %v6418_v37  ;;  %3133 = vmatpush3.msra.mxu1 %v4034_v15  ;;  %v119_v15 = vld [vmem:[%s5990_s0 + $0x1c] sm:$0xff] }
  0x78   :  { %3099 = vmatprep.subr.mxu0 %v6419_v5  ;;  %3134 = vmatprep.subr.mxu1 %v4046_v17  ;;  %v6424_v17 = vld [vmem:[#allocation30_spill] sm:$0xff] }
  0x79   :  { %3100 = vmatpush3.msra.mxu0 %v6420_v7  ;;  %3135 = vmatpush3.msra.mxu1 %v4058_v19  ;;  %v6425_v19 = vld [vmem:[#allocation32_spill] sm:$0xff] }
  0x7a   :  { %3101 = vmatprep.subr.mxu0 %v6421_v9  ;;  %3136 = vmatprep.subr.mxu1 %v4070_v21  ;;  %v6426_v21 = vld [vmem:[#allocation51_spill] sm:$0xff] }
  0x7b   :  { %3102 = vmatpush3.msra.mxu0 %v6422_v11  ;;  %3137 = vmatpush3.msra.mxu1 %v4082_v23  ;;  %vm135_vm6 = vcmp.le.f32.partialorder %v119_v15, %v6426_v21  ;;  %v6428_v23 = vld [vmem:[#allocation36_spill] sm:$0xff] }
  0x7c   :  { %3103 = vmatprep.subr.mxu0 %v6423_v13  ;;  %3138 = vmatprep.subr.mxu1 %v4094_v25  ;;  %v6430_v25 = vld [vmem:[#allocation40_spill] sm:$0xff] }
  0x7d   :  { %3104 = vmatpush3.msra.mxu0 %v6424_v17  ;;  %3139 = vmatpush3.msra.mxu1 %v4106_v27  ;;  %v2847_v27 = vsel %vm135_vm6, 1.0, %v6368_v50  ;;  %v6432_v15 = vld [vmem:[#allocation44_spill] sm:$0xff] }
  0x7e   :  { %3105 = vmatprep.subr.mxu0 %v6425_v19  ;;  %3140 = vmatprep.subr.mxu1 %v4118_v29  ;;  %v6431_v29 = vld [vmem:[#allocation42_spill] sm:$0xff] }
  0x7f   :  { %3106 = vmatpush3.msra.mxu0 %v6427_v3  ;;  %3141 = vmatpush3.msra.mxu1 %v4130_v34  ;;  %v828_v34 = vcombine.high %v2847_v27, %v2847_v27 }
  0x80   :  { %3107 = vmatprep.subr.mxu0 %v6428_v23  ;;  %3142 = vmatprep.subr.mxu1 %v4142_v36  ;;  %v6433_v36 = vld [vmem:[#allocation46_spill] sm:$0xff] }
  0x81   :  { %3108 = vmatpush3.msra.mxu0 %v6429_v47  ;;  %3143 = vmatpush3.msra.mxu1 %v4154_v38  ;;  %v6434_v38 = vld [vmem:[#allocation48_spill] sm:$0xff] }
  0x82   :  { %3109 = vmatprep.subr.mxu0 %v6430_v25  ;;  %3144 = vmatprep.subr.mxu1 %v6393_v26  ;;  %v120_v26 = vld [vmem:[%s5990_s0 + $0x24] sm:$0x3f] }
  0x83   :  { %3110 = vmatpush3.msra.mxu0 %v6431_v29  ;;  %3145 = vmatpush3.msra.mxu1 %v6394_v39  ;;  %v835_v39 = vrot.slane %v2847_v27, %v4221_v52  ;;  %vm136_vm7 = vcmp.le.f32.partialorder %v120_v26, %v6398_v12 }
  0x84   :  { %3111 = vmatprep.subr.mxu0 %v6432_v15  ;;  %3146 = vmatprep.subr.mxu1 %v6395_v6  ;;  %v6435_v6 = vld [vmem:[#allocation52_spill] sm:$0xff] }
  0x85   :  { %3112 = vmatpush3.msra.mxu0 %v6433_v36  ;;  %3147 = vmatpush3.msra.mxu1 %v6396_v8  ;;  %v842_v8 = vrot.slane %v828_v34, %v4221_v52  ;;  %v843_v27 = vcombine.high %v835_v39, %v835_v39 }
  0x86   :  { %3113 = vmatprep.subr.mxu0 %v6434_v38  ;;  %3148 = vmatprep.subr.mxu1 %v6397_v10 }
  0x87   :  { %3114 = vmatpush3.msra.mxu0 %v4219_v51  ;;  %3149 = vmatpush3.msra.mxu1 %v6399_v4  ;;  %v844_v34 = vcombine.high %v842_v8, %v842_v8 }
  0x88   :  { %3115 = vmatprep.subr.mxu0 %v6435_v6  ;;  %3150 = vmatprep.subr.mxu1 %v6400_v2  ;;  %v4762_v2 = vsel %vm136_vm7, 1.0, %v6368_v50 }
  0x89   :  { %3116 = vmatpush3.msra.mxu0 %v4256_v58  ;;  %3151 = vmatpush3.msra.mxu1 %v6401_v14  ;;  %v845_v26 = vcombine.high %v4762_v2, %v4762_v2 }
  0x8a   :  { %3117 = vmatprep.subr.mxu0 %v4266_v60  ;;  %3152 = vmatprep.subr.mxu1 %v6402_v30 }
  0x8b   :  { %3118 = vmatpush3.msra.mxu0 %v4290_v42  ;;  %3153 = vmatpush3.msra.mxu1 %v6404_v56 }
  0x8c   :  { %3119 = vmatprep.subr.mxu0 %v4302_v62  ;;  %3154 = vmatprep.subr.mxu1 %v6405_v54 }
  0x8d   :  { %3120 = vmatpush3.msra.mxu0 %v4316_v59  ;;  %3155 = vmatpush3.msra.mxu1 %v6406_v40 }
  0x8e   :  { %3121 = vmatprep.subr.mxu0 %v4328_v31  ;;  %3156 = vmatprep.subr.mxu1 %v6407_v24  ;;  %v859_v24 = vrot.slane %v845_v26, %v4221_v52  ;;  %v6475_v26 = vld [vmem:[#allocation43_spill] sm:$0xff] }
  0x8f   :  { %3122 = vmatpush3.msra.mxu0 %v4340_v32  ;;  %933 = vmatprep.mubr.f32.mxu0 %v843_v27  ;;  %v6438_v27 = vld [vmem:[#allocation66_spill] sm:$0xff] }
  0x90   :  { %3157 = vmatpush3.msra.mxu1 %v6408_v18  ;;  %1003 = vmatprep.mubr.f32.mxu1 %v844_v34  ;;  %v6474_v34 = vld [vmem:[#allocation41_spill] sm:$0xff] }
  0x91   :  { %934 = vmatmul.mubr.f32.vlgmr.msra.gmra.mxu0 %v835_v39  ;;  %1004 = vmatmul.mubr.f32.vlgmr.msra.gmra.mxu1 %v842_v8  ;;  %v6436_v8 = vld [vmem:[#allocation64_spill] sm:$0xff]  ;;  %v6437_v39 = vld [vmem:[#allocation65_spill] sm:$0xff] }
  0x92   :  { %3161 = vmatprep.subr.mxu0 %v4358_v61  ;;  %3753 = vmatprep.subr.mxu1 %v6368_v50 }
  0x93   :  { %3162 = vmatpush3.msra.mxu0 %v4366_v44  ;;  %3754 = vmatpush3.msra.mxu1 %v6409_v33 }
  0x94   :  { %3163 = vmatprep.subr.mxu0 %v4376_v41  ;;  %3755 = vmatprep.subr.mxu1 %v6368_v50 }
  0x95   :  { %3164 = vmatpush3.msra.mxu0 %v4383_v55  ;;  %3756 = vmatpush3.msra.mxu1 %v6410_v16 }
  0x96   :  { %3757 = vmatprep.mubr.msk.f32.mxu1 %vm3924_vm3, %v6368_v50  ;;  %3165 = vmatprep.subr.mxu0 %v4395_v57 }
  0x97   :  { %3758 = vmatmul.mubr.msk.f32.vlgmr.msra.gmra.mxu1 %vm220_vm2, %v859_v24  ;;  %3199 = vmatprep.subr.mxu1 %v6411_v20  ;;  %v6439_v24 = vld [vmem:[#allocation67_spill] sm:$0xff]  ;;  %v6440_v20 = vld [vmem:[#allocation68_spill] sm:$0xff] }
  0x98   :  { %3166 = vmatpush3.msra.mxu0 %v4405_v63  ;;  %3200 = vmatpush3.msra.mxu1 %v6412_v48  ;;  %v6441_v48 = vld [vmem:[#allocation69_spill] sm:$0xff] }
  0x99   :  { %3167 = vmatprep.subr.mxu0 %v4413_v53  ;;  %3201 = vmatprep.subr.mxu1 %v6413_v46  ;;  %v6442_v46 = vld [vmem:[#allocation70_spill] sm:$0xff] }
  0x9a   :  { %3168 = vmatpush3.msra.mxu0 %v6436_v8  ;;  %3202 = vmatpush3.msra.mxu1 %v6414_v28  ;;  %v6443_v28 = vld [vmem:[#allocation71_spill] sm:$0xff] }
  0x9b   :  { %3169 = vmatprep.subr.mxu0 %v6437_v39  ;;  %3203 = vmatprep.subr.mxu1 %v6415_v22  ;;  %v6445_v22 = vld [vmem:[#allocation73_spill] sm:$0xff] }
  0x9c   :  { %3170 = vmatpush3.msra.mxu0 %v6438_v27  ;;  %3204 = vmatpush3.msra.mxu1 %v6416_v49  ;;  %v6444_v49 = vld [vmem:[#allocation72_spill] sm:$0xff] }
  0x9d   :  { %3171 = vmatprep.subr.mxu0 %v6439_v24  ;;  %3205 = vmatprep.subr.mxu1 %v6417_v1  ;;  %v6446_v1 = vld [vmem:[#allocation74_spill] sm:$0xff] }
  0x9e   :  { %3172 = vmatpush3.msra.mxu0 %v6440_v20  ;;  %3206 = vmatpush3.msra.mxu1 %v6418_v37  ;;  %v6453_v37 = vld [vmem:[#allocation81_spill] sm:$0xff] }
  0x9f   :  { %3173 = vmatprep.subr.mxu0 %v6441_v48  ;;  %3207 = vmatprep.subr.mxu1 %v6419_v5  ;;  %v6447_v5 = vld [vmem:[#allocation75_spill] sm:$0xff] }
  0xa0   :  { %3174 = vmatpush3.msra.mxu0 %v6442_v46  ;;  %3208 = vmatpush3.msra.mxu1 %v6420_v7  ;;  %v6448_v7 = vld [vmem:[#allocation76_spill] sm:$0xff] }
  0xa1   :  { %3175 = vmatprep.subr.mxu0 %v6443_v28  ;;  %3209 = vmatprep.subr.mxu1 %v6421_v9  ;;  %v121_v9 = vld [vmem:[%s5990_s0 + $0x2a] sm:$0xff] }
  0xa2   :  { %3176 = vmatpush3.msra.mxu0 %v6444_v49  ;;  %3210 = vmatpush3.msra.mxu1 %v6422_v11  ;;  %v6449_v11 = vld [vmem:[#allocation77_spill] sm:$0xff]  ;;  %vm137_vm8 = vcmp.le.f32.partialorder %v121_v9, %v6426_v21  ;;  %v5035_v9 = vld [vmem:[%s5992_s2 + $0xd8] sm:$0xff] }
  0xa3   :  { %3177 = vmatprep.subr.mxu0 %v6445_v22  ;;  %3211 = vmatprep.subr.mxu1 %v6423_v13  ;;  %v6450_v13 = vld [vmem:[#allocation78_spill] sm:$0xff]  ;;  %6495 = vst [vmem:[#allocation12_spill] sm:$0xff] %v5035_v9 }
  0xa4   :  { %3178 = vmatpush3.msra.mxu0 %v6446_v1  ;;  %3212 = vmatpush3.msra.mxu1 %v6424_v17  ;;  %v6451_v17 = vld [vmem:[#allocation79_spill] sm:$0xff] }
  0xa5   :  { %3179 = vmatprep.subr.mxu0 %v6447_v5  ;;  %3213 = vmatprep.subr.mxu1 %v6425_v19  ;;  %v6452_v19 = vld [vmem:[#allocation80_spill] sm:$0xff] }
  0xa6   :  { %3180 = vmatpush3.msra.mxu0 %v6448_v7  ;;  %3214 = vmatpush3.msra.mxu1 %v6427_v3  ;;  %v852_v3 = vrot.slane %v4762_v2, %v4221_v52 }
  0xa7   :  { %3181 = vmatprep.subr.mxu0 %v6449_v11  ;;  %3215 = vmatprep.subr.mxu1 %v6428_v23  ;;  %v4835_v23 = vsel %vm137_vm8, 1.0, %v6368_v50 }
  0xa8   :  { %3182 = vmatpush3.msra.mxu0 %v6450_v13  ;;  %3216 = vmatpush3.msra.mxu1 %v6429_v47  ;;  %v860_v2 = vcombine.high %v852_v3, %v852_v3  ;;  %v1158_v21 = vrot.slane %v4835_v23, %v4221_v52  ;;  %v6457_v47 = vld [vmem:[#allocation7_spill] sm:$0xff] }
  0xa9   :  { %3183 = vmatprep.subr.mxu0 %v6451_v17  ;;  %3217 = vmatprep.subr.mxu1 %v6430_v25  ;;  %v6454_v25 = vld [vmem:[#allocation82_spill] sm:$0xff] }
  0xaa   :  { %3184 = vmatpush3.msra.mxu0 %v6452_v19  ;;  %3218 = vmatpush3.msra.mxu1 %v6431_v29  ;;  %v6455_v29 = vld [vmem:[#allocation83_spill] sm:$0xff] }
  0xab   :  { %3185 = vmatprep.subr.mxu0 %v6453_v37  ;;  %3219 = vmatprep.subr.mxu1 %v6432_v15  ;;  %v6473_v15 = vld [vmem:[#allocation39_spill] sm:$0xff] }
  0xac   :  { %3186 = vmatpush3.msra.mxu0 %v4549_v35  ;;  %3220 = vmatpush3.msra.mxu1 %v6433_v36  ;;  %v6456_v36 = vld [vmem:[#allocation84_spill] sm:$0xff] }
  0xad   :  { %3187 = vmatprep.subr.mxu0 %v6454_v25  ;;  %3221 = vmatprep.subr.mxu1 %v6434_v38  ;;  %v1166_v38 = vcombine.high %v1158_v21, %v1158_v21 }
  0xae   :  { %3188 = vmatpush3.msra.mxu0 %v4566_v0  ;;  %3222 = vmatpush3.msra.mxu1 %v4219_v51  ;;  %v6458_v51 = vld [vmem:[#allocation9_spill] sm:$0xff] }
  0xaf   :  { %3189 = vmatprep.subr.mxu0 %v4573_v43  ;;  %3223 = vmatprep.subr.mxu1 %v6435_v6  ;;  %v4855_v6 = vld [vmem:[%s5992_s2 + $0x1f8] sm:$0xff] }
  0xb0   :  { %3190 = vmatpush3.msra.mxu0 %v4583_v45  ;;  %3224 = vmatpush3.msra.mxu1 %v4256_v58  ;;  %v6459_v58 = vld [vmem:[#allocation11_spill] sm:$0xff] }
  0xb1   :  { %3191 = vmatprep.subr.mxu0 %v6455_v29  ;;  %3225 = vmatprep.subr.mxu1 %v4266_v60  ;;  %v6460_v60 = vld [vmem:[#allocation13_spill] sm:$0xff] }
  0xb2   :  { %3192 = vmatpush3.msra.mxu0 %v6456_v36  ;;  %1073 = vmatprep.mubr.f32.mxu0 %v860_v2  ;;  %v5077_v2 = vld [vmem:[%s5992_s2 + $0x150] sm:$0xff] }
  0xb3   :  { %3226 = vmatpush3.msra.mxu1 %v4290_v42  ;;  %1074 = vmatmul.mubr.f32.vlgmr.msra.gmra.mxu0 %v852_v3  ;;  %v6461_v42 = vld [vmem:[#allocation15_spill] sm:$0xff]  ;;  %6501 = vst [vmem:[#allocation24_spill] sm:$0xff] %v5077_v2 }
  0xb4   :  { %3227 = vmatprep.subr.mxu1 %v4302_v62  ;;  %3234 = vmatprep.subr.mxu0 %v4855_v6  ;;  %v6463_v62 = vld [vmem:[#allocation19_spill] sm:$0xff] }
  0xb5   :  { %3228 = vmatpush3.msra.mxu1 %v4316_v59  ;;  %3235 = vmatpush3.msra.mxu0 %v6457_v47  ;;  %v6462_v59 = vld [vmem:[#allocation17_spill] sm:$0xff] }
  0xb6   :  { %3229 = vmatprep.subr.mxu1 %v4328_v31  ;;  %3236 = vmatprep.subr.mxu0 %v6458_v51  ;;  %v6465_v31 = vld [vmem:[#allocation23_spill] sm:$0xff]  ;;  %v5092_v47 = vld [vmem:[%s5992_s2 + $0x1c8] sm:$0xff] }
  0xb7   :  { %3230 = vmatpush3.msra.mxu1 %v4340_v32  ;;  %1256 = vmatprep.mubr.f32.mxu1 %v1166_v38  ;;  %v6464_v32 = vld [vmem:[#allocation21_spill] sm:$0xff] }
  0xb8   :  { %3237 = vmatpush3.msra.mxu0 %v6459_v58  ;;  %1257 = vmatmul.mubr.f32.vlgmr.msra.gmra.mxu1 %v1158_v21  ;;  %v5086_v38 = vld [vmem:[%s5992_s2 + $0xc8] sm:$0xff] }
  0xb9   :  { %3238 = vmatprep.subr.mxu0 %v6460_v60  ;;  %3269 = vmatprep.subr.mxu1 %v4358_v61  ;;  %v6466_v61 = vld [vmem:[#allocation25_spill] sm:$0xff] }
  0xba   :  { %3239 = vmatpush3.msra.mxu0 %v6461_v42  ;;  %3270 = vmatpush3.msra.mxu1 %v4366_v44  ;;  %v6467_v44 = vld [vmem:[#allocation27_spill] sm:$0xff]  ;;  %v5098_v60 = vld [vmem:[%s5992_s2 + $0x48] sm:$0xff] }
  0xbb   :  { %3240 = vmatprep.subr.mxu0 %v6462_v59  ;;  %3271 = vmatprep.subr.mxu1 %v4376_v41  ;;  %v6468_v41 = vld [vmem:[#allocation29_spill] sm:$0xff]  ;;  %6502 = vst [vmem:[#allocation26_spill] sm:$0xff] %v5098_v60 }
  0xbc   :  { %3241 = vmatpush3.msra.mxu0 %v6463_v62  ;;  %3272 = vmatpush3.msra.mxu1 %v4383_v55  ;;  %v6469_v55 = vld [vmem:[#allocation31_spill] sm:$0xff]  ;;  %v5104_v42 = vld [vmem:[%s5992_s2 + $0x148] sm:$0xff]  ;;  %v5110_v59 = vld [vmem:[%s5992_s2 + $0xc0] sm:$0xff] }
  0xbd   :  { %3242 = vmatprep.subr.mxu0 %v6464_v32  ;;  %3273 = vmatprep.subr.mxu1 %v4395_v57  ;;  %v6470_v57 = vld [vmem:[#allocation33_spill] sm:$0xff]  ;;  %6503 = vst [vmem:[#allocation28_spill] sm:$0xff] %v5110_v59 }
  0xbe   :  { %3243 = vmatpush3.msra.mxu0 %v6465_v31  ;;  %3274 = vmatpush3.msra.mxu1 %v4405_v63  ;;  %v6471_v63 = vld [vmem:[#allocation35_spill] sm:$0xff]  ;;  %v5116_v62 = vld [vmem:[%s5992_s2 + $0x1c0] sm:$0xff] }
  0xbf   :  { %3244 = vmatprep.subr.mxu0 %v6466_v61  ;;  %3275 = vmatprep.subr.mxu1 %v4413_v53  ;;  %v6472_v53 = vld [vmem:[#allocation37_spill] sm:$0xff]  ;;  %6504 = vst [vmem:[#allocation30_spill] sm:$0xff] %v5116_v62 }
  0xc0   :  { %3245 = vmatpush3.msra.mxu0 %v6467_v44  ;;  %3276 = vmatpush3.msra.mxu1 %v6436_v8  ;;  %v1151_v8 = vcombine.high %v4835_v23, %v4835_v23  ;;  %v5065_v23 = vld [vmem:[%s5992_s2 + $0x1d0] sm:$0xff]  ;;  %v5124_v31 = vld [vmem:[%s5991_s1] sm:$0xff] }
  0xc1   :  { %3246 = vmatprep.subr.mxu0 %v6468_v41  ;;  %3277 = vmatprep.subr.mxu1 %v6437_v39  ;;  %v122_v39 = vld [vmem:[%s5990_s0 + $0x32] sm:$0x3f]  ;;  %6500 = vst [vmem:[#allocation22_spill] sm:$0xff] %v5065_v23  ;;  %6505 = vst [vmem:[#allocation32_spill] sm:$0xff] %v5124_v31  ;;  %v5130_v61 = vld [vmem:[%s5992_s2 + $0x40] sm:$0xff] }
  0xc2   :  { %3247 = vmatpush3.msra.mxu0 %v6469_v55  ;;  %3278 = vmatpush3.msra.mxu1 %v6438_v27  ;;  %v6476_v27 = vld [vmem:[#allocation45_spill] sm:$0xff]  ;;  %vm138_vm9 = vcmp.le.f32.partialorder %v122_v39, %v6398_v12  ;;  %6506 = vst [vmem:[#allocation51_spill] sm:$0xff] %v5130_v61  ;;  %v5144_v55 = vld [vmem:[%s5992_s2 + $0xb8] sm:$0xff]  ;;  %v5181_v39 = vld [vmem:[%s5992_s2 + $0x30] sm:$0xff] }
  0xc3   :  { %3248 = vmatprep.subr.mxu0 %v6470_v57  ;;  %3279 = vmatprep.subr.mxu1 %v6439_v24  ;;  %v6477_v24 = vld [vmem:[#allocation47_spill] sm:$0xff]  ;;  %v5136_v44 = vld [vmem:[%s5992_s2 + $0x140] sm:$0xff]  ;;  %6508 = vst [vmem:[#allocation36_spill] sm:$0xff] %v5144_v55  ;;  %6514 = vst [vmem:[#allocation48_spill] sm:$0xff] %v5181_v39 }
  0xc4   :  { %3249 = vmatpush3.msra.mxu0 %v6471_v63  ;;  %3280 = vmatpush3.msra.mxu1 %v6440_v20  ;;  %v1165_v20 = vrot.slane %v1151_v8, %v4221_v52  ;;  %6507 = vst [vmem:[#allocation34_spill] sm:$0xff] %v5136_v44  ;;  %v5150_v57 = vld [vmem:[%s5992_s2 + $0x1b8] sm:$0xff]  ;;  %v5175_v8 = vld [vmem:[%s5992_s2 + $0x1b0] sm:$0xff] }
  0xc5   :  { %3250 = vmatprep.subr.mxu0 %v6472_v53  ;;  %3281 = vmatprep.subr.mxu1 %v6441_v48  ;;  %v6478_v48 = vld [vmem:[#allocation53_spill] sm:$0xff]  ;;  %6509 = vst [vmem:[#allocation38_spill] sm:$0xff] %v5150_v57  ;;  %v5156_v63 = vld [vmem:[%s5992_s2 + $0x38] sm:$0xff]  ;;  %6513 = vst [vmem:[#allocation46_spill] sm:$0xff] %v5175_v8 }
  0xc6   :  { %3251 = vmatpush3.msra.mxu0 %v6473_v15  ;;  %3282 = vmatpush3.msra.mxu1 %v6442_v46  ;;  %v4993_v46 = vld [vmem:[%s5992_s2 + $0x1e8] sm:$0xff]  ;;  %6510 = vst [vmem:[#allocation40_spill] sm:$0xff] %v5156_v63  ;;  %v5162_v53 = vld [vmem:[%s5992_s2 + $0x138] sm:$0xff] }
  0xc7   :  { %3252 = vmatprep.subr.mxu0 %v6474_v34  ;;  %3283 = vmatprep.subr.mxu1 %v6443_v28  ;;  %6488 = vst [vmem:[#allocation61_spill] sm:$0xff] %v4993_v46  ;;  %v4999_v28 = vld [vmem:[%s5992_s2 + $0x68] sm:$0xff]  ;;  %6511 = vst [vmem:[#allocation42_spill] sm:$0xff] %v5162_v53 }
  0xc8   :  { %3253 = vmatpush3.msra.mxu0 %v6475_v26  ;;  %3284 = vmatpush3.msra.mxu1 %v6444_v49  ;;  %6489 = vst [vmem:[#allocation62_spill] sm:$0xff] %v4999_v28  ;;  %v5005_v49 = vld [vmem:[%s5992_s2 + $0x168] sm:$0xff]  ;;  %v5169_v26 = vld [vmem:[%s5992_s2 + $0xb0] sm:$0xff] }
  0xc9   :  { %3254 = vmatprep.subr.mxu0 %v6476_v27  ;;  %3285 = vmatprep.subr.mxu1 %v6445_v22  ;;  %6490 = vst [vmem:[#allocation63_spill] sm:$0xff] %v5005_v49  ;;  %v5011_v22 = vld [vmem:[%s5992_s2 + $0xe0] sm:$0xff]  ;;  %6512 = vst [vmem:[#allocation44_spill] sm:$0xff] %v5169_v26  ;;  %v5187_v27 = vld [vmem:[%s5992_s2 + $0x130] sm:$0xff] }
  0xca   :  { %3255 = vmatpush3.msra.mxu0 %v6477_v24  ;;  %3286 = vmatpush3.msra.mxu1 %v6446_v1  ;;  %6491 = vst [vmem:[#allocation5_spill] sm:$0xff] %v5011_v22  ;;  %v5017_v1 = vld [vmem:[%s5992_s2 + $0x1e0] sm:$0xff]  ;;  %6515 = vst [vmem:[#allocation52_spill] sm:$0xff] %v5187_v27  ;;  %v5193_v24 = vld [vmem:[%s5992_s2 + $0xa8] sm:$0xff] }
  0xcb   :  { %3256 = vmatprep.subr.mxu0 %v6397_v10  ;;  %3287 = vmatprep.subr.mxu1 %v6447_v5  ;;  %v2850_v10 = vsel %vm138_vm9, 1.0, %v6368_v50  ;;  %6492 = vst [vmem:[#allocation6_spill] sm:$0xff] %v5017_v1  ;;  %v5023_v5 = vld [vmem:[%s5992_s2 + $0x60] sm:$0xff]  ;;  %6516 = vst [vmem:[#allocation64_spill] sm:$0xff] %v5193_v24 }
  0xcc   :  { %3257 = vmatpush3.msra.mxu0 %v6399_v4  ;;  %3288 = vmatpush3.msra.mxu1 %v6448_v7  ;;  %v1167_v4 = vcombine.high %v1165_v20, %v1165_v20  ;;  %v1175_v12 = vrot.slane %v2850_v10, %v4221_v52  ;;  %6493 = vst [vmem:[#allocation8_spill] sm:$0xff] %v5023_v5  ;;  %v5029_v7 = vld [vmem:[%s5992_s2 + $0x160] sm:$0xff] }
  0xcd   :  { %3258 = vmatprep.subr.mxu0 %v6478_v48  ;;  %3289 = vmatprep.subr.mxu1 %v6449_v11  ;;  %6494 = vst [vmem:[#allocation10_spill] sm:$0xff] %v5029_v7  ;;  %v5041_v11 = vld [vmem:[%s5992_s2 + $0x1d8] sm:$0xff] }
  0xce   :  { %3259 = vmatpush3.msra.mxu0 %v6401_v14  ;;  %3290 = vmatpush3.msra.mxu1 %v6450_v13  ;;  %v6479_v14 = vld [vmem:[#allocation60_spill] sm:$0xff]  ;;  %6496 = vst [vmem:[#allocation14_spill] sm:$0xff] %v5041_v11 }
  0xcf   :  { %3260 = vmatprep.subr.mxu0 %v6402_v30  ;;  %3291 = vmatprep.subr.mxu1 %v6451_v17  ;;  %v1168_v30 = vcombine.high %v2850_v10, %v2850_v10  ;;  %v5047_v13 = vld [vmem:[%s5992_s2 + $0x58] sm:$0xff]  ;;  %v5205_v10 = vld [vmem:[%s5992_s2 + $0x28] sm:$0xff] }
  0xd0   :  { %3261 = vmatpush3.msra.mxu0 %v6404_v56  ;;  %3292 = vmatpush3.msra.mxu1 %v6452_v19  ;;  %v1183_v56 = vcombine.high %v1175_v12, %v1175_v12  ;;  %6497 = vst [vmem:[#allocation16_spill] sm:$0xff] %v5047_v13  ;;  %v5053_v17 = vld [vmem:[%s5992_s2 + $0x158] sm:$0xff]  ;;  %6518 = vst [vmem:[#allocation66_spill] sm:$0xff] %v5205_v10 }
  0xd1   :  { %3262 = vmatprep.subr.mxu0 %v6405_v54  ;;  %3293 = vmatprep.subr.mxu1 %v6453_v37  ;;  %v4981_v54 = vld [vmem:[%s5992_s2 + $0x170] sm:$0xff]  ;;  %6498 = vst [vmem:[#allocation18_spill] sm:$0xff] %v5053_v17 }
  0xd2   :  { %3263 = vmatpush3.msra.mxu0 %v6406_v40  ;;  %3294 = vmatpush3.msra.mxu1 %v4549_v35  ;;  %v4943_v35 = vld [vmem:[%s5992_s2 + $0xf8] sm:$0xff]  ;;  %6486 = vst [vmem:[#allocation58_spill] sm:$0xff] %v4981_v54  ;;  %v5059_v37 = vld [vmem:[%s5992_s2 + $0xd0] sm:$0xff] }
  0xd3   :  { %3264 = vmatprep.subr.mxu0 %v6479_v14  ;;  %3295 = vmatprep.subr.mxu1 %v6454_v25  ;;  %6480 = vst [vmem:[#allocation49_spill] sm:$0xff] %v4943_v35  ;;  %v4957_v40 = vld [vmem:[%s5992_s2 + $0x178] sm:$0xff]  ;;  %6499 = vst [vmem:[#allocation20_spill] sm:$0xff] %v5059_v37  ;;  %v5071_v25 = vld [vmem:[%s5992_s2 + $0x50] sm:$0xff] }
  0xd4   :  { %3265 = vmatpush3.msra.mxu0 %v6408_v18  ;;  %1326 = vmatprep.mubr.f32.mxu0 %v1167_v4  ;;  %v1182_v18 = vrot.slane %v1168_v30, %v4221_v52  ;;  %6482 = vst [vmem:[#allocation50_spill] sm:$0xff] %v4957_v40  ;;  %v5211_v4 = vld [vmem:[%s5992_s2 + $0x128] sm:$0xff]  ;;  %v5223_v14 = vld [vmem:[%s5992_s2 + $0x1a0] sm:$0xff] }
  0xd5   :  { %3296 = vmatpush3.msra.mxu1 %v4566_v0  ;;  %1327 = vmatmul.mubr.f32.vlgmr.msra.gmra.mxu0 %v1165_v20  ;;  %v4975_v0 = vld [vmem:[%s5992_s2 + $0x70] sm:$0xff]  ;;  %v5199_v20 = vld [vmem:[%s5992_s2 + $0x1a8] sm:$0xff]  ;;  %6519 = vst [vmem:[#allocation67_spill] sm:$0xff] %v5211_v4  ;;  %6521 = vst [vmem:[#allocation69_spill] sm:$0xff] %v5223_v14 }
  0xd6   :  { %3297 = vmatprep.subr.mxu1 %v4573_v43  ;;  %3760 = vmatprep.subr.mxu0 %v6368_v50  ;;  %v4963_v43 = vld [vmem:[%s5992_s2 + $0xf0] sm:$0xff]  ;;  %6485 = vst [vmem:[#allocation57_spill] sm:$0xff] %v4975_v0  ;;  %6517 = vst [vmem:[#allocation65_spill] sm:$0xff] %v5199_v20  ;;  %v124_v30 = vld [vmem:[%s5990_s0 + $0x40] sm:$0x3f] }
  0xd7   :  { %3298 = vmatpush3.msra.mxu1 %v4583_v45  ;;  %3761 = vmatpush3.msra.mxu0 %v6409_v33  ;;  %v4951_v33 = vld [vmem:[%s5992_s2 + $0x78] sm:$0xff]  ;;  %6483 = vst [vmem:[#allocation54_spill] sm:$0xff] %v4963_v43  ;;  %v4969_v45 = vld [vmem:[%s5992_s2 + $0x1f0] sm:$0xff] }
  0xd8   :  { %3299 = vmatprep.subr.mxu1 %v6455_v29  ;;  %3762 = vmatprep.subr.mxu0 %v6368_v50  ;;  %6481 = vst [vmem:[#allocation56_spill] sm:$0xff] %v4951_v33  ;;  %6484 = vst [vmem:[#allocation55_spill] sm:$0xff] %v4969_v45 }
  0xd9   :  { %3300 = vmatpush3.msra.mxu1 %v6456_v36  ;;  %1396 = vmatprep.mubr.f32.mxu1 %v1183_v56  ;;  %v123_v36 = vld [vmem:[%s5990_s0 + $0x38] sm:$0xff]  ;;  %v5232_v56 = vld [vmem:[%s5992_s2 + $0x20] sm:$0xff] }
  0xda   :  { %3763 = vmatpush3.msra.mxu0 %v6410_v16  ;;  %1397 = vmatmul.mubr.f32.vlgmr.msra.gmra.mxu1 %v1175_v12  ;;  %v4987_v16 = vld [vmem:[%s5992_s2 + $0xe8] sm:$0xff]  ;;  %vm139_vm10 = vcmp.le.f32.partialorder %v123_v36, %v5124_v31  ;;  %v5217_v12 = vld [vmem:[%s5992_s2 + $0xa0] sm:$0xff]  ;;  %6522 = vst [vmem:[#allocation70_spill] sm:$0xff] %v5232_v56  ;;  %v5258_v36 = vld [vmem:[%s5992_s2 + $0x18] sm:$0xff] }
  0xdb   :  { %3764 = vmatprep.mubr.msk.f32.mxu0 %vm3924_vm3, %v6368_v50  ;;  %3307 = vmatprep.subr.mxu0 %v4943_v35  ;;  %6487 = vst [vmem:[#allocation59_spill] sm:$0xff] %v4987_v16  ;;  %v2851_v34 = vsel %vm139_vm10, 1.0, %v6368_v50  ;;  %6520 = vst [vmem:[#allocation68_spill] sm:$0xff] %v5217_v12  ;;  %vm2827_vm10 = vcmask 74752  }
  0xdc   :  { %3342 = vmatprep.subr.mxu1 %v4855_v6  ;;  %3765 = vmatmul.mubr.msk.f32.vlgmr.msra.gmra.mxu0 %vm220_vm2, %v1182_v18  ;;  %v1474_v48 = vcombine.high %v2851_v34, %v2851_v34  ;;  %v5238_v18 = vld [vmem:[%s5992_s2 + $0x120] sm:$0xff]  ;;  %6526 = vst [vmem:[#allocation74_spill] sm:$0xff] %v5258_v36 }
  0xdd   :  { %3308 = vmatpush3.msra.mxu0 %v4951_v33  ;;  %3343 = vmatpush3.msra.mxu1 %v4957_v40  ;;  %6523 = vst [vmem:[#allocation71_spill] sm:$0xff] %v5238_v18 }
  0xde   :  { %3309 = vmatprep.subr.mxu0 %v4963_v43  ;;  %3344 = vmatprep.subr.mxu1 %v4969_v45 }
  0xdf   :  { %3310 = vmatpush3.msra.mxu0 %v4975_v0  ;;  %3345 = vmatpush3.msra.mxu1 %v4981_v54 }
  0xe0   :  { %3311 = vmatprep.subr.mxu0 %v4987_v16  ;;  %3346 = vmatprep.subr.mxu1 %v4993_v46 }
  0xe1   :  { %3312 = vmatpush3.msra.mxu0 %v4999_v28  ;;  %3347 = vmatpush3.msra.mxu1 %v5005_v49 }
  0xe2   :  { %3313 = vmatprep.subr.mxu0 %v5011_v22  ;;  %3348 = vmatprep.subr.mxu1 %v5017_v1 }
  0xe3   :  { %3314 = vmatpush3.msra.mxu0 %v5023_v5  ;;  %3349 = vmatpush3.msra.mxu1 %v5029_v7 }
  0xe4   :  { %3315 = vmatprep.subr.mxu0 %v5035_v9  ;;  %3350 = vmatprep.subr.mxu1 %v5041_v11 }
  0xe5   :  { %3316 = vmatpush3.msra.mxu0 %v5047_v13  ;;  %3351 = vmatpush3.msra.mxu1 %v5053_v17  ;;  %v2907_v19 = vpop.f32.mrf.mxu0  ;;  %v2942_v3 = vpop.f32.mrf.mxu1 }
  0xe6   :  { %3317 = vmatprep.subr.mxu0 %v5059_v37  ;;  %3352 = vmatprep.subr.mxu1 %v5065_v23 }
  0xe7   :  { %3318 = vmatpush3.msra.mxu0 %v5071_v25  ;;  %3353 = vmatpush3.msra.mxu1 %v5077_v2  ;;  %v2908_v21 = vpop.f32.mrf.mxu0  ;;  %v2943_v29 = vpop.f32.mrf.mxu1 }
  0xe8   :  { %3319 = vmatprep.subr.mxu0 %v5086_v38  ;;  %3354 = vmatprep.subr.mxu1 %v5092_v47  ;;  %v2909_v51 = vadd.f32 %v2908_v21, %v2907_v19  ;;  %v2944_v58 = vadd.f32 %v2943_v29, %v2942_v3  ;;  %v1481_v19 = vrot.slane %v2851_v34, %v4221_v52  ;;  %v5245_v3 = vld [vmem:[%s5992_s2 + $0x98] sm:$0xff]  ;;  %v5282_v34 = vld [vmem:[%s5992_s2 + $0x190] sm:$0xff] }
  0xe9   :  { %3320 = vmatpush3.msra.mxu0 %v5098_v60  ;;  %3355 = vmatpush3.msra.mxu1 %v5104_v42  ;;  %6524 = vst [vmem:[#allocation72_spill] sm:$0xff] %v5245_v3  ;;  %v5251_v21 = vld [vmem:[%s5992_s2 + $0x198] sm:$0xff]  ;;  %v1488_v29 = vrot.slane %v1474_v48, %v4221_v52  ;;  %6529 = vst [vmem:[#allocation77_spill] sm:$0xff] %v5282_v34  ;;  %v5288_v48 = vld [vmem:[%s5992_s2 + $0x10] sm:$0xff] }
  0xea   :  { %3321 = vmatprep.subr.mxu0 %v5110_v59  ;;  %3356 = vmatprep.subr.mxu1 %v5116_v62  ;;  %v5119_v32 = vadd.f32 %v2944_v58, %v2909_v51  ;;  %6525 = vst [vmem:[#allocation73_spill] sm:$0xff] %v5251_v21  ;;  %v5264_v51 = vld [vmem:[%s5992_s2 + $0x118] sm:$0xff]  ;;  %v5270_v58 = vld [vmem:[%s5991_s1 + $0x8] sm:$0x3f] }
  0xeb   :  { %3322 = vmatpush3.msra.mxu0 %v5130_v61  ;;  %3357 = vmatpush3.msra.mxu1 %v5136_v44  ;;  %v5139_v41 = vpop.f32.mrf.mxu1  ;;  %6527 = vst [vmem:[#allocation75_spill] sm:$0xff] %v5264_v51  ;;  %6528 = vst [vmem:[#allocation76_spill] sm:$0xff] %v5270_v58  ;;  %vm140_vm11 = vcmp.le.f32.partialorder %v124_v30, %v5270_v58  ;;  %v5294_v30 = vld [vmem:[%s5992_s2 + $0x110] sm:$0xff] }
  0xec   :  { %3323 = vmatprep.subr.mxu0 %v5144_v55  ;;  %3358 = vmatprep.subr.mxu1 %v5150_v57  ;;  %6530 = vst [vmem:[#allocation78_spill] sm:$0xff] %v5294_v30  ;;  %v5310_v58 = vsel %vm140_vm11, 1.0, %v6368_v50  ;;  %v5451_v57 = vld [vmem:[%s5992_s2 + $0x2c8] sm:$0xff] }
  0xed   :  { %3324 = vmatpush3.msra.mxu0 %v5156_v63  ;;  %3359 = vmatpush3.msra.mxu1 %v5162_v53  ;;  %v3745_v15 = vpop.f32.mrf.mxu1  ;;  %v5444_v53 = vld [vmem:[%s5992_s2 + $0x250] sm:$0xff]  ;;  %6545 = vst [vmem:[#allocation23_spill] sm:$0xff] %v5451_v57 }
  0xee   :  { %3325 = vmatprep.subr.mxu0 %v5169_v26  ;;  %3360 = vmatprep.subr.mxu1 %v5175_v8  ;;  %v5276_v15 = vld [vmem:[%s5992_s2 + $0x90] sm:$0xff]  ;;  %v5402_v8 = vld [vmem:[%s5992_s2 + $0x268] sm:$0xff]  ;;  %6544 = vst [vmem:[#allocation21_spill] sm:$0xff] %v5444_v53 }
  0xef   :  { %3326 = vmatpush3.msra.mxu0 %v5181_v39  ;;  %3361 = vmatpush3.msra.mxu1 %v5187_v27  ;;  %v5347_v27 = vld [vmem:[%s5992_s2 + $0x100] sm:$0xff]  ;;  %6538 = vst [vmem:[#allocation9_spill] sm:$0xff] %v5402_v8 }
  0xf0   :  { %3327 = vmatprep.subr.mxu0 %v5193_v24  ;;  %3362 = vmatprep.subr.mxu1 %v5199_v20  ;;  %v5339_v20 = vld [vmem:[%s5992_s2] sm:$0xff]  ;;  %6534 = vst [vmem:[#allocation82_spill] sm:$0xff] %v5347_v27 }
  0xf1   :  { %3328 = vmatpush3.msra.mxu0 %v5205_v10  ;;  %3363 = vmatpush3.msra.mxu1 %v5211_v4  ;;  %v5333_v4 = vld [vmem:[%s5992_s2 + $0x180] sm:$0xff] }
  0xf2   :  { %3329 = vmatprep.subr.mxu0 %v5217_v12  ;;  %3364 = vmatprep.subr.mxu1 %v5223_v14  ;;  %v5321_v14 = vld [vmem:[%s5992_s2 + $0x108] sm:$0xff]  ;;  %6533 = vst [vmem:[#allocation81_spill] sm:$0xff] %v5333_v4 }
  0xf3   :  { %3330 = vmatpush3.msra.mxu0 %v5232_v56  ;;  %3365 = vmatpush3.msra.mxu1 %v5238_v18  ;;  %v1490_v18 = vcombine.high %v1488_v29, %v1488_v29  ;;  %6532 = vst [vmem:[#allocation80_spill] sm:$0xff] %v5321_v14 }
  0xf4   :  { %3331 = vmatprep.subr.mxu0 %v5245_v3  ;;  %3366 = vmatprep.subr.mxu1 %v5251_v21  ;;  %v5300_v21 = vld [vmem:[%s5992_s2 + $0x88] sm:$0xff] }
  0xf5   :  { %3332 = vmatpush3.msra.mxu0 %v5258_v36  ;;  %3367 = vmatpush3.msra.mxu1 %v5264_v51  ;;  %v1489_v51 = vcombine.high %v1481_v19, %v1481_v19 }
  0xf6   :  { %3333 = vmatprep.subr.mxu0 %v5276_v15  ;;  %3368 = vmatprep.subr.mxu1 %v5282_v34  ;;  %v5306_v34 = vld [vmem:[%s5992_s2 + $0x188] sm:$0xff] }
  0xf7   :  { %3334 = vmatpush3.msra.mxu0 %v5288_v48  ;;  %3369 = vmatpush3.msra.mxu1 %v5294_v30  ;;  %6531 = vst [vmem:[#allocation79_spill] sm:$0xff] %v5306_v34  ;;  %v5315_v30 = vld [vmem:[%s5992_s2 + $0x8] sm:$0xff] }
  0xf8   :  { %3335 = vmatprep.subr.mxu0 %v5300_v21  ;;  %3370 = vmatprep.subr.mxu1 %v5306_v34  ;;  %v5327_v34 = vld [vmem:[%s5992_s2 + $0x80] sm:$0xff] }
  0xf9   :  { %3336 = vmatpush3.msra.mxu0 %v5315_v30  ;;  %3371 = vmatpush3.msra.mxu1 %v5321_v14  ;;  %v1491_v14 = vcombine.high %v5310_v58, %v5310_v58 }
  0xfa   :  { %3337 = vmatprep.subr.mxu0 %v5327_v34  ;;  %3372 = vmatprep.subr.mxu1 %v5333_v4  ;;  %v5353_v4 = vld [vmem:[%s5992_s2 + $0x2f8] sm:$0xff] }
  0xfb   :  { %3338 = vmatpush3.msra.mxu0 %v5339_v20  ;;  %1579 = vmatprep.mubr.f32.mxu0 %v1489_v51  ;;  %v5360_v51 = vld [vmem:[%s5992_s2 + $0x278] sm:$0xff] }
  0xfc   :  { %3373 = vmatpush3.msra.mxu1 %v5347_v27  ;;  %1649 = vmatprep.mubr.f32.mxu1 %v1490_v18  ;;  %v5366_v18 = vld [vmem:[%s5992_s2 + $0x308] sm:$0xff]  ;;  %v5380_v27 = vld [vmem:[%s5992_s2 + $0x270] sm:$0xff] }
  0xfd   :  { %1580 = vmatmul.mubr.f32.vlgmr.msra.gmra.mxu0 %v1481_v19  ;;  %1650 = vmatmul.mubr.f32.vlgmr.msra.gmra.mxu1 %v1488_v29  ;;  %6535 = vst [vmem:[#allocation83_spill] sm:$0xff] %v5366_v18  ;;  %v1505_v19 = vrot.slane %v1491_v14, %v4221_v52  ;;  %v5373_v29 = vld [vmem:[%s5992_s2 + $0x2f0] sm:$0xff]  ;;  %v5386_v14 = vld [vmem:[%s5992_s2 + $0x300] sm:$0xff] }
  0xfe   :  { %3377 = vmatprep.subr.mxu0 %v5353_v4  ;;  %3767 = vmatprep.subr.mxu1 %v6368_v50  ;;  %6536 = vst [vmem:[#allocation84_spill] sm:$0xff] %v5386_v14 }
  0xff   :  { %3378 = vmatpush3.msra.mxu0 %v5360_v51  ;;  %3768 = vmatpush3.msra.mxu1 %v5366_v18  ;;  %v5394_v18 = vld [vmem:[%s5992_s2 + $0x2e8] sm:$0xff] }
 0x100   :  { %3379 = vmatprep.subr.mxu0 %v5373_v29  ;;  %3769 = vmatprep.subr.mxu1 %v6368_v50  ;;  %6537 = vst [vmem:[#allocation7_spill] sm:$0xff] %v5394_v18 }
 0x101   :  { %3380 = vmatpush3.msra.mxu0 %v5380_v27  ;;  %3770 = vmatpush3.msra.mxu1 %v5386_v14  ;;  %v5409_v14 = vld [vmem:[%s5992_s2 + $0x2e0] sm:$0xff] }
 0x102   :  { %3771 = vmatprep.mubr.msk.f32.mxu1 %vm3924_vm3, %v6368_v50  ;;  %3381 = vmatprep.subr.mxu0 %v5394_v18  ;;  %6539 = vst [vmem:[#allocation11_spill] sm:$0xff] %v5409_v14 }
 0x103   :  { %3772 = vmatmul.mubr.msk.f32.vlgmr.msra.gmra.mxu1 %vm220_vm2, %v1505_v19  ;;  %3415 = vmatprep.subr.mxu1 %v4943_v35  ;;  %v5416_v19 = vld [vmem:[%s5992_s2 + $0x260] sm:$0xff] }
 0x104   :  { %3382 = vmatpush3.msra.mxu0 %v5402_v8  ;;  %3416 = vmatpush3.msra.mxu1 %v4951_v33  ;;  %6540 = vst [vmem:[#allocation13_spill] sm:$0xff] %v5416_v19  ;;  %v5423_v33 = vld [vmem:[%s5992_s2 + $0x2d8] sm:$0xff] }
 0x105   :  { %3383 = vmatprep.subr.mxu0 %v5409_v14  ;;  %3417 = vmatprep.subr.mxu1 %v4963_v43  ;;  %6541 = vst [vmem:[#allocation15_spill] sm:$0xff] %v5423_v33  ;;  %v5430_v43 = vld [vmem:[%s5992_s2 + $0x258] sm:$0xff] }
 0x106   :  { %3384 = vmatpush3.msra.mxu0 %v5416_v19  ;;  %3418 = vmatpush3.msra.mxu1 %v4975_v0  ;;  %6542 = vst [vmem:[#allocation17_spill] sm:$0xff] %v5430_v43  ;;  %v5437_v0 = vld [vmem:[%s5992_s2 + $0x2d0] sm:$0xff] }
 0x107   :  { %3385 = vmatprep.subr.mxu0 %v5423_v33  ;;  %3419 = vmatprep.subr.mxu1 %v4987_v16  ;;  %v2977_v35 = vpop.f32.mrf.mxu0  ;;  %6543 = vst [vmem:[#allocation19_spill] sm:$0xff] %v5437_v0 }
 0x108   :  { %3386 = vmatpush3.msra.mxu0 %v5430_v43  ;;  %3420 = vmatpush3.msra.mxu1 %v4999_v28 }
 0x109   :  { %3387 = vmatprep.subr.mxu0 %v5437_v0  ;;  %3421 = vmatprep.subr.mxu1 %v5011_v22  ;;  %v2978_v16 = vpop.f32.mrf.mxu0  ;;  %v5458_v22 = vld [vmem:[%s5992_s2 + $0x248] sm:$0xff] }
 0x10a   :  { %3388 = vmatpush3.msra.mxu0 %v5444_v53  ;;  %3422 = vmatpush3.msra.mxu1 %v5023_v5  ;;  %v2979_v28 = vadd.f32 %v2978_v16, %v2977_v35  ;;  %6546 = vst [vmem:[#allocation25_spill] sm:$0xff] %v5458_v22  ;;  %v5466_v5 = vld [vmem:[%s5992_s2 + $0x2c0] sm:$0xff] }
 0x10b   :  { %3389 = vmatprep.subr.mxu0 %v5451_v57  ;;  %3423 = vmatprep.subr.mxu1 %v5035_v9  ;;  %6547 = vst [vmem:[#allocation27_spill] sm:$0xff] %v5466_v5  ;;  %v5473_v9 = vld [vmem:[%s5992_s2 + $0x240] sm:$0xff] }
 0x10c   :  { %3390 = vmatpush3.msra.mxu0 %v5458_v22  ;;  %3424 = vmatpush3.msra.mxu1 %v5047_v13  ;;  %v430_v35 = vadd.f32 %v2979_v28, %v5119_v32  ;;  %v3015_v16 = vpop.f32.mrf.mxu1  ;;  %6548 = vst [vmem:[#allocation29_spill] sm:$0xff] %v5473_v9  ;;  %v5483_v13 = vld [vmem:[%s5992_s2 + $0x2b8] sm:$0xff] }
 0x10d   :  { %3391 = vmatprep.subr.mxu0 %v5466_v5  ;;  %3425 = vmatprep.subr.mxu1 %v5059_v37  ;;  %6549 = vst [vmem:[#allocation31_spill] sm:$0xff] %v5483_v13 }
 0x10e   :  { %3392 = vmatpush3.msra.mxu0 %v5473_v9  ;;  %3426 = vmatpush3.msra.mxu1 %v5071_v25  ;;  %v5478_v28 = vadd.f32 %v5139_v41, %v430_v35  ;;  %v3016_v32 = vpop.f32.mrf.mxu1  ;;  %v5492_v9 = vld [vmem:[%s5992_s2 + $0x238] sm:$0xff]  ;;  %v5499_v41 = vld [vmem:[%s5992_s2 + $0x2b0] sm:$0xff] }
 0x10f   :  { %3393 = vmatprep.subr.mxu0 %v5483_v13  ;;  %3427 = vmatprep.subr.mxu1 %v5086_v38  ;;  %v5487_v37 = vadd.f32 %v3016_v32, %v3015_v16  ;;  %6550 = vst [vmem:[#allocation33_spill] sm:$0xff] %v5492_v9  ;;  %6551 = vst [vmem:[#allocation35_spill] sm:$0xff] %v5499_v41  ;;  %v5506_v35 = vld [vmem:[%s5992_s2 + $0x230] sm:$0xff]  ;;  %v125_v16 = vld [vmem:[%s5990_s0 + $0x46] sm:$0xff] }
 0x110   :  { %3394 = vmatpush3.msra.mxu0 %v5492_v9  ;;  %3428 = vmatpush3.msra.mxu1 %v5098_v60  ;;  %6552 = vst [vmem:[#allocation37_spill] sm:$0xff] %v5506_v35  ;;  %v5516_v32 = vld [vmem:[%s5992_s2 + $0x2a8] sm:$0xff]  ;;  %vm141_vm12 = vcmp.le.f32.partialorder %v125_v16, %v5124_v31  ;;  %v5547_v60 = vld [vmem:[%s5992_s2 + $0x298] sm:$0xff] }
 0x111   :  { %3395 = vmatprep.subr.mxu0 %v5499_v41  ;;  %3429 = vmatprep.subr.mxu1 %v5110_v59  ;;  %6553 = vst [vmem:[#allocation39_spill] sm:$0xff] %v5516_v32  ;;  %v5523_v59 = vld [vmem:[%s5992_s2 + $0x228] sm:$0xff]  ;;  %6557 = vst [vmem:[#allocation47_spill] sm:$0xff] %v5547_v60  ;;  %v5554_v16 = vld [vmem:[%s5992_s2 + $0x218] sm:$0xff] }
 0x112   :  { %3396 = vmatpush3.msra.mxu0 %v5506_v35  ;;  %3430 = vmatpush3.msra.mxu1 %v5130_v61  ;;  %6554 = vst [vmem:[#allocation41_spill] sm:$0xff] %v5523_v59  ;;  %v5530_v61 = vld [vmem:[%s5992_s2 + $0x2a0] sm:$0xff]  ;;  %6558 = vst [vmem:[#allocation53_spill] sm:$0xff] %v5554_v16  ;;  %v5587_v31 = vld [vmem:[%s5992_s2 + $0x208] sm:$0xff] }
 0x113   :  { %3397 = vmatprep.subr.mxu0 %v5516_v32  ;;  %3431 = vmatprep.subr.mxu1 %v5144_v55  ;;  %6555 = vst [vmem:[#allocation43_spill] sm:$0xff] %v5530_v61  ;;  %v5538_v55 = vld [vmem:[%s5992_s2 + $0x220] sm:$0xff]  ;;  %6561 = vst [vmem:[#allocation86_spill] sm:$0xff] %v5587_v31 }
 0x114   :  { %3398 = vmatpush3.msra.mxu0 %v5523_v59  ;;  %3432 = vmatpush3.msra.mxu1 %v5156_v63  ;;  %6556 = vst [vmem:[#allocation45_spill] sm:$0xff] %v5538_v55  ;;  %v1498_v63 = vrot.slane %v5310_v58, %v4221_v52  ;;  %v5559_v58 = vsel %vm141_vm12, 1.0, %v6368_v50 }
 0x115   :  { %3399 = vmatprep.subr.mxu0 %v5530_v61  ;;  %3433 = vmatprep.subr.mxu1 %v5169_v26  ;;  %v5578_v26 = vld [vmem:[%s5992_s2 + $0x288] sm:$0xff] }
 0x116   :  { %3400 = vmatpush3.msra.mxu0 %v5538_v55  ;;  %3434 = vmatpush3.msra.mxu1 %v5181_v39  ;;  %v5564_v39 = vld [vmem:[%s5992_s2 + $0x290] sm:$0xff]  ;;  %6560 = vst [vmem:[#allocation85_spill] sm:$0xff] %v5578_v26 }
 0x117   :  { %3401 = vmatprep.subr.mxu0 %v5547_v60  ;;  %3435 = vmatprep.subr.mxu1 %v5193_v24  ;;  %v5571_v24 = vld [vmem:[%s5992_s2 + $0x210] sm:$0xff] }
 0x118   :  { %3402 = vmatpush3.msra.mxu0 %v5554_v16  ;;  %3436 = vmatpush3.msra.mxu1 %v5205_v10  ;;  %6559 = vst [vmem:[#allocation60_spill] sm:$0xff] %v5571_v24  ;;  %v1506_v10 = vcombine.high %v1498_v63, %v1498_v63 }
 0x119   :  { %3403 = vmatprep.subr.mxu0 %v5564_v39  ;;  %3437 = vmatprep.subr.mxu1 %v5217_v12  ;;  %v1804_v12 = vrot.slane %v5559_v58, %v4221_v52 }
 0x11a   :  { %3404 = vmatpush3.msra.mxu0 %v5571_v24  ;;  %3438 = vmatpush3.msra.mxu1 %v5232_v56  ;;  %v5594_v56 = vld [vmem:[%s5992_s2 + $0x280] sm:$0xff] }
 0x11b   :  { %3405 = vmatprep.subr.mxu0 %v5578_v26  ;;  %3439 = vmatprep.subr.mxu1 %v5245_v3  ;;  %6562 = vst [vmem:[#allocation87_spill] sm:$0xff] %v5594_v56  ;;  %v5601_v3 = vld [vmem:[%s5992_s2 + $0x200] sm:$0xff] }
 0x11c   :  { %3406 = vmatpush3.msra.mxu0 %v5587_v31  ;;  %3440 = vmatpush3.msra.mxu1 %v5258_v36  ;;  %6563 = vst [vmem:[#allocation88_spill] sm:$0xff] %v5601_v3  ;;  %v1812_v36 = vcombine.high %v1804_v12, %v1804_v12 }
 0x11d   :  { %3407 = vmatprep.subr.mxu0 %v5594_v56  ;;  %3441 = vmatprep.subr.mxu1 %v5276_v15 }
 0x11e   :  { %3408 = vmatpush3.msra.mxu0 %v5601_v3  ;;  %1719 = vmatprep.mubr.f32.mxu0 %v1506_v10 }
 0x11f   :  { %3442 = vmatpush3.msra.mxu1 %v5288_v48  ;;  %1720 = vmatmul.mubr.f32.vlgmr.msra.gmra.mxu0 %v1498_v63 }
 0x120   :  { %3443 = vmatprep.subr.mxu1 %v5300_v21  ;;  %3450 = vmatprep.subr.mxu0 %v4855_v6 }
 0x121   :  { %3444 = vmatpush3.msra.mxu1 %v5315_v30  ;;  %3451 = vmatpush3.msra.mxu0 %v4957_v40 }
 0x122   :  { %3445 = vmatprep.subr.mxu1 %v5327_v34  ;;  %3452 = vmatprep.subr.mxu0 %v4969_v45 }
 0x123   :  { %3446 = vmatpush3.msra.mxu1 %v5339_v20  ;;  %1902 = vmatprep.mubr.f32.mxu1 %v1812_v36 }
 0x124   :  { %3453 = vmatpush3.msra.mxu0 %v4981_v54  ;;  %1903 = vmatmul.mubr.f32.vlgmr.msra.gmra.mxu1 %v1804_v12 }
 0x125   :  { %3454 = vmatprep.subr.mxu0 %v4993_v46  ;;  %3485 = vmatprep.subr.mxu1 %v5353_v4 }
 0x126   :  { %3455 = vmatpush3.msra.mxu0 %v5005_v49  ;;  %3486 = vmatpush3.msra.mxu1 %v5360_v51 }
 0x127   :  { %3456 = vmatprep.subr.mxu0 %v5017_v1  ;;  %3487 = vmatprep.subr.mxu1 %v5373_v29 }
 0x128   :  { %3457 = vmatpush3.msra.mxu0 %v5029_v7  ;;  %3488 = vmatpush3.msra.mxu1 %v5380_v27 }
 0x129   :  { %3458 = vmatprep.subr.mxu0 %v5041_v11  ;;  %3489 = vmatprep.subr.mxu1 %v5394_v18  ;;  %v3050_v63 = vpop.f32.mrf.mxu0  ;;  %v2764_v18 = vmul.f32 0.5, %v5478_v28  ;;  %v6566_v28 = vld [vmem:[#allocation46_spill] sm:$0xff] }
 0x12a   :  { %3459 = vmatpush3.msra.mxu0 %v5053_v17  ;;  %3490 = vmatpush3.msra.mxu1 %v5402_v8 }
 0x12b   :  { %3460 = vmatprep.subr.mxu0 %v5065_v23  ;;  %3491 = vmatprep.subr.mxu1 %v5409_v14  ;;  %v3051_v10 = vpop.f32.mrf.mxu0  ;;  %vm2766_vm13 = vcmp.ge.f32.partialorder %v2764_v18, 1.0  ;;  %v1797_v14 = vcombine.high %v5559_v58, %v5559_v58 }
 0x12c   :  { %3461 = vmatpush3.msra.mxu0 %v5077_v2  ;;  %3492 = vmatpush3.msra.mxu1 %v5416_v19  ;;  %v3052_v12 = vadd.f32 %v3051_v10, %v3050_v63  ;;  %v6565_v19 = vld [vmem:[#allocation42_spill] sm:$0xff] }
 0x12d   :  { %3462 = vmatprep.subr.mxu0 %v5092_v47  ;;  %3493 = vmatprep.subr.mxu1 %v5423_v33  ;;  %v6564_v33 = vld [vmem:[#allocation38_spill] sm:$0xff] }
 0x12e   :  { %3463 = vmatpush3.msra.mxu0 %v5104_v42  ;;  %3494 = vmatpush3.msra.mxu1 %v5430_v43  ;;  %v683_v36 = vadd.f32 %v3052_v12, %v5487_v37  ;;  %v3085_v8 = vpop.f32.mrf.mxu1 }
 0x12f   :  { %3464 = vmatprep.subr.mxu0 %v5116_v62  ;;  %3495 = vmatprep.subr.mxu1 %v5437_v0  ;;  %v6567_v0 = vld [vmem:[#allocation52_spill] sm:$0xff] }
 0x130   :  { %3465 = vmatpush3.msra.mxu0 %v5136_v44  ;;  %3496 = vmatpush3.msra.mxu1 %v5444_v53  ;;  %v822_v63 = vpop.f32.mrf.mxu0  ;;  %v3086_v10 = vpop.f32.mrf.mxu1  ;;  %v6568_v53 = vld [vmem:[#allocation29_spill] sm:$0xff] }
 0x131   :  { %3466 = vmatprep.subr.mxu0 %v6564_v33  ;;  %3497 = vmatprep.subr.mxu1 %v5451_v57  ;;  %v3087_v43 = vadd.f32 %v3086_v10, %v3085_v8  ;;  %v126_v8 = vld [vmem:[%s5990_s0 + $0x4e] sm:$0x3f]  ;;  %v6569_v10 = vld [vmem:[#allocation65_spill] sm:$0xff] }
 0x132   :  { %3467 = vmatpush3.msra.mxu0 %v6565_v19  ;;  %3498 = vmatpush3.msra.mxu1 %v5458_v22  ;;  %v3752_v37 = vpop.f32.mrf.mxu0  ;;  %v2770_v22 = vsel %vm2766_vm13, 0.0, %v2764_v18  ;;  %v6575_v57 = vld [vmem:[#allocation75_spill] sm:$0xff] }
 0x133   :  { %3468 = vmatprep.subr.mxu0 %v6566_v28  ;;  %3499 = vmatprep.subr.mxu1 %v5466_v5  ;;  %v753_v12 = vadd.f32 %v3087_v43, %v683_v36  ;;  %v6570_v5 = vld [vmem:[#allocation67_spill] sm:$0xff]  ;;  %v6571_v43 = vld [vmem:[#allocation69_spill] sm:$0xff]  ;;  %v6572_v36 = vld [vmem:[#allocation76_spill] sm:$0xff] }
 0x134   :  { %3469 = vmatpush3.msra.mxu0 %v6567_v0  ;;  %3500 = vmatpush3.msra.mxu1 %v6568_v53  ;;  %vm142_vm14 = vcmp.le.f32.partialorder %v126_v8, %v6572_v36  ;;  %v6573_v53 = vld [vmem:[#allocation71_spill] sm:$0xff] }
 0x135   :  { %3470 = vmatprep.subr.mxu0 %v6569_v10  ;;  %3501 = vmatprep.subr.mxu1 %v5483_v13  ;;  %v823_v37 = vadd.f32 %v822_v63, %v753_v12  ;;  %v1811_v13 = vrot.slane %v1797_v14, %v4221_v52  ;;  %v6574_v63 = vld [vmem:[#allocation73_spill] sm:$0xff] }
 0x136   :  { %3471 = vmatpush3.msra.mxu0 %v6570_v5  ;;  %3502 = vmatpush3.msra.mxu1 %v5492_v9  ;;  %v6578_v9 = vld [vmem:[#allocation79_spill] sm:$0xff] }
 0x137   :  { %3472 = vmatprep.subr.mxu0 %v6571_v43  ;;  %3503 = vmatprep.subr.mxu1 %v5499_v41  ;;  %v2771_v58 = vsub.f32 %v823_v37, %v2770_v22  ;;  %v2854_v41 = vsel %vm142_vm14, 1.0, %v6368_v50  ;;  %v6576_v37 = vld [vmem:[#allocation77_spill] sm:$0xff]  ;;  %v1813_v14 = vcombine.high %v1811_v13, %v1811_v13 }
 0x138   :  { %3473 = vmatpush3.msra.mxu0 %v6573_v53  ;;  %3504 = vmatpush3.msra.mxu1 %v5506_v35  ;;  %v6577_v35 = vld [vmem:[#allocation78_spill] sm:$0xff] }
 0x139   :  { %3474 = vmatprep.subr.mxu0 %v6574_v63  ;;  %3505 = vmatprep.subr.mxu1 %v5516_v32  ;;  %v2772_v12 = vmul.f32 0.5, %v2771_v58  ;;  %v1821_v58 = vrot.slane %v2854_v41, %v4221_v52  ;;  %v6579_v32 = vld [vmem:[#allocation80_spill] sm:$0xff] }
 0x13a   :  { %3475 = vmatpush3.msra.mxu0 %v6575_v57  ;;  %3506 = vmatpush3.msra.mxu1 %v5523_v59  ;;  %v2867_v59 = vsel %vm2766_vm13, 1.0, %v6368_v50 }
 0x13b   :  { %3476 = vmatprep.subr.mxu0 %v6576_v37  ;;  %3507 = vmatprep.subr.mxu1 %v5530_v61  ;;  %v5670_v8 = vadd.f32 %v2772_v12, %v2770_v22  ;;  %v6580_v12 = vld [vmem:[#allocation81_spill] sm:$0xff]  ;;  %v1814_v61 = vcombine.high %v2854_v41, %v2854_v41  ;;  %v1829_v18 = vcombine.high %v1821_v58, %v1821_v58  ;;  %v6583_v41 = vld [vmem:[#allocation84_spill] sm:$0xff] }
 0x13c   :  { %3477 = vmatpush3.msra.mxu0 %v6577_v35  ;;  %3508 = vmatpush3.msra.mxu1 %v5538_v55  ;;  %v6581_v55 = vld [vmem:[#allocation82_spill] sm:$0xff] }
 0x13d   :  { %3478 = vmatprep.subr.mxu0 %v6578_v9  ;;  %3509 = vmatprep.subr.mxu1 %v5547_v60  ;;  %vm2774_vm15 = vcmp.ge.f32.partialorder %v5670_v8, 1.0 }
 0x13e   :  { %3479 = vmatpush3.msra.mxu0 %v6579_v32  ;;  %3510 = vmatpush3.msra.mxu1 %v5554_v16  ;;  %v2868_v22 = vsel %vm2774_vm15, 1.0, %v6368_v50  ;;  %v6582_v16 = vld [vmem:[#allocation83_spill] sm:$0xff] }
 0x13f   :  { %3480 = vmatprep.subr.mxu0 %v6580_v12  ;;  %3511 = vmatprep.subr.mxu1 %v5564_v39  ;;  %v5687_v60 = vadd.f32 %v2868_v22, %v2867_v59  ;;  %v1828_v59 = vrot.slane %v1814_v61, %v4221_v52  ;;  %v6586_v61 = vld [vmem:[#allocation54_spill] sm:$0xff]  ;;  %v6587_v22 = vld [vmem:[#allocation57_spill] sm:$0xff] }
 0x140   :  { %3481 = vmatpush3.msra.mxu0 %v6581_v55  ;;  %1972 = vmatprep.mubr.f32.mxu0 %v1813_v14  ;;  %v6585_v14 = vld [vmem:[#allocation56_spill] sm:$0xff] }
 0x141   :  { %3512 = vmatpush3.msra.mxu1 %v5571_v24  ;;  %1973 = vmatmul.mubr.f32.vlgmr.msra.gmra.mxu0 %v1811_v13  ;;  %v6584_v13 = vld [vmem:[#allocation49_spill] sm:$0xff] }
 0x142   :  { %3513 = vmatprep.subr.mxu1 %v5578_v26  ;;  %3774 = vmatprep.subr.mxu0 %v6368_v50  ;;  %v6598_v26 = vld [vmem:[#allocation51_spill] sm:$0xff] }
 0x143   :  { %3514 = vmatpush3.msra.mxu1 %v5587_v31  ;;  %3775 = vmatpush3.msra.mxu0 %v6582_v16  ;;  %v6597_v31 = vld [vmem:[#allocation32_spill] sm:$0xff] }
 0x144   :  { %3515 = vmatprep.subr.mxu1 %v5594_v56  ;;  %3776 = vmatprep.subr.mxu0 %v6368_v50  ;;  %v6595_v56 = vld [vmem:[#allocation26_spill] sm:$0xff] }
 0x145   :  { %3516 = vmatpush3.msra.mxu1 %v5601_v3  ;;  %2042 = vmatprep.mubr.f32.mxu1 %v1829_v18  ;;  %v6589_v18 = vld [vmem:[#allocation62_spill] sm:$0xff]  ;;  %v6594_v3 = vld [vmem:[#allocation20_spill] sm:$0xff] }
 0x146   :  { %3777 = vmatpush3.msra.mxu0 %v6583_v41  ;;  %2043 = vmatmul.mubr.f32.vlgmr.msra.gmra.mxu1 %v1821_v58  ;;  %v6588_v58 = vld [vmem:[#allocation59_spill] sm:$0xff] }
 0x147   :  { %3778 = vmatprep.mubr.msk.f32.mxu0 %vm3924_vm3, %v6368_v50  ;;  %3523 = vmatprep.subr.mxu0 %v6584_v13 }
 0x148   :  { %3558 = vmatprep.subr.mxu1 %v4855_v6  ;;  %3779 = vmatmul.mubr.msk.f32.vlgmr.msra.gmra.mxu0 %vm220_vm2, %v1828_v59  ;;  %v6590_v6 = vld [vmem:[#allocation5_spill] sm:$0xff]  ;;  %v6591_v59 = vld [vmem:[#allocation8_spill] sm:$0xff] }
 0x149   :  { %3524 = vmatpush3.msra.mxu0 %v6585_v14  ;;  %3559 = vmatpush3.msra.mxu1 %v4957_v40 }
 0x14a   :  { %3525 = vmatprep.subr.mxu0 %v6586_v61  ;;  %3560 = vmatprep.subr.mxu1 %v4969_v45  ;;  %v6592_v45 = vld [vmem:[#allocation12_spill] sm:$0xff] }
 0x14b   :  { %3526 = vmatpush3.msra.mxu0 %v6587_v22  ;;  %3561 = vmatpush3.msra.mxu1 %v4981_v54  ;;  %v6593_v54 = vld [vmem:[#allocation16_spill] sm:$0xff] }
 0x14c   :  { %3527 = vmatprep.subr.mxu0 %v6588_v58  ;;  %3562 = vmatprep.subr.mxu1 %v4993_v46 }
 0x14d   :  { %3528 = vmatpush3.msra.mxu0 %v6589_v18  ;;  %3563 = vmatpush3.msra.mxu1 %v5005_v49 }
 0x14e   :  { %3529 = vmatprep.subr.mxu0 %v6590_v6  ;;  %3564 = vmatprep.subr.mxu1 %v5017_v1 }
 0x14f   :  { %3530 = vmatpush3.msra.mxu0 %v6591_v59  ;;  %3565 = vmatpush3.msra.mxu1 %v5029_v7 }
 0x150   :  { %3531 = vmatprep.subr.mxu0 %v6592_v45  ;;  %3566 = vmatprep.subr.mxu1 %v5041_v11  ;;  %v127_v11 = vld [vmem:[%s5990_s0 + $0x54] sm:$0xff] }
 0x151   :  { %3532 = vmatpush3.msra.mxu0 %v6593_v54  ;;  %3567 = vmatpush3.msra.mxu1 %v5053_v17  ;;  %v3123_v46 = vpop.f32.mrf.mxu0  ;;  %v3158_v40 = vpop.f32.mrf.mxu1  ;;  %vm143_vm0 = vcmp.le.f32.partialorder %v127_v11, %v6597_v31  ;;  %v6602_v11 = vld [vmem:[#allocation48_spill] sm:$0xff] }
 0x152   :  { %3533 = vmatprep.subr.mxu0 %v6594_v3  ;;  %3568 = vmatprep.subr.mxu1 %v5065_v23  ;;  %v6596_v23 = vld [vmem:[#allocation28_spill] sm:$0xff] }
 0x153   :  { %3534 = vmatpush3.msra.mxu0 %v5071_v25  ;;  %3569 = vmatpush3.msra.mxu1 %v5077_v2  ;;  %v3124_v1 = vpop.f32.mrf.mxu0  ;;  %v3159_v7 = vpop.f32.mrf.mxu1 }
 0x154   :  { %3535 = vmatprep.subr.mxu0 %v5086_v38  ;;  %3570 = vmatprep.subr.mxu1 %v5092_v47  ;;  %v3125_v17 = vadd.f32 %v3124_v1, %v3123_v46  ;;  %v3160_v49 = vadd.f32 %v3159_v7, %v3158_v40  ;;  %v6599_v46 = vld [vmem:[#allocation36_spill] sm:$0xff] }
 0x155   :  { %3536 = vmatpush3.msra.mxu0 %v6595_v56  ;;  %3571 = vmatpush3.msra.mxu1 %v5104_v42  ;;  %v6600_v40 = vld [vmem:[#allocation40_spill] sm:$0xff] }
 0x156   :  { %3537 = vmatprep.subr.mxu0 %v6596_v23  ;;  %3572 = vmatprep.subr.mxu1 %v5116_v62  ;;  %v5736_v2 = vadd.f32 %v3160_v49, %v3125_v17  ;;  %v2855_v49 = vsel %vm143_vm0, 1.0, %v6368_v50  ;;  %v6601_v7 = vld [vmem:[#allocation44_spill] sm:$0xff]  ;;  %v6608_v62 = vld [vmem:[#allocation74_spill] sm:$0xff] }
 0x157   :  { %3538 = vmatpush3.msra.mxu0 %v6598_v26  ;;  %3573 = vmatpush3.msra.mxu1 %v5136_v44  ;;  %v5741_v24 = vpop.f32.mrf.mxu1  ;;  %v6603_v17 = vld [vmem:[#allocation64_spill] sm:$0xff]  ;;  %v6604_v44 = vld [vmem:[#allocation66_spill] sm:$0xff] }
 0x158   :  { %3539 = vmatprep.subr.mxu0 %v6599_v46  ;;  %3574 = vmatprep.subr.mxu1 %v6564_v33  ;;  %v2120_v33 = vcombine.high %v2855_v49, %v2855_v49 }
 0x159   :  { %3540 = vmatpush3.msra.mxu0 %v6600_v40  ;;  %3575 = vmatpush3.msra.mxu1 %v6565_v19  ;;  %v3759_v1 = vpop.f32.mrf.mxu1  ;;  %v6606_v19 = vld [vmem:[#allocation70_spill] sm:$0xff] }
 0x15a   :  { %3541 = vmatprep.subr.mxu0 %v6601_v7  ;;  %3576 = vmatprep.subr.mxu1 %v6566_v28  ;;  %v6605_v1 = vld [vmem:[#allocation68_spill] sm:$0xff] }
 0x15b   :  { %3542 = vmatpush3.msra.mxu0 %v6602_v11  ;;  %3577 = vmatpush3.msra.mxu1 %v6567_v0  ;;  %v128_v28 = vld [vmem:[%s5990_s0 + $0x5c] sm:$0x3f]  ;;  %v2127_v0 = vrot.slane %v2855_v49, %v4221_v52 }
 0x15c   :  { %3543 = vmatprep.subr.mxu0 %v6603_v17  ;;  %3578 = vmatprep.subr.mxu1 %v6569_v10  ;;  %v6607_v10 = vld [vmem:[#allocation72_spill] sm:$0xff]  ;;  %vm144_vm1 = vcmp.le.f32.partialorder %v128_v28, %v6572_v36 }
 0x15d   :  { %3544 = vmatpush3.msra.mxu0 %v6604_v44  ;;  %3579 = vmatpush3.msra.mxu1 %v6570_v5  ;;  %v2134_v5 = vrot.slane %v2120_v33, %v4221_v52  ;;  %v2135_v49 = vcombine.high %v2127_v0, %v2127_v0 }
 0x15e   :  { %3545 = vmatprep.subr.mxu0 %v6605_v1  ;;  %3580 = vmatprep.subr.mxu1 %v6571_v43 }
 0x15f   :  { %3546 = vmatpush3.msra.mxu0 %v6606_v19  ;;  %3581 = vmatpush3.msra.mxu1 %v6573_v53  ;;  %v2136_v33 = vcombine.high %v2134_v5, %v2134_v5 }
 0x160   :  { %3547 = vmatprep.subr.mxu0 %v6607_v10  ;;  %3582 = vmatprep.subr.mxu1 %v6574_v63  ;;  %v5777_v63 = vsel %vm144_vm1, 1.0, %v6368_v50 }
 0x161   :  { %3548 = vmatpush3.msra.mxu0 %v6608_v62  ;;  %3583 = vmatpush3.msra.mxu1 %v6575_v57  ;;  %v2137_v28 = vcombine.high %v5777_v63, %v5777_v63 }
 0x162   :  { %3549 = vmatprep.subr.mxu0 %v5276_v15  ;;  %3584 = vmatprep.subr.mxu1 %v6576_v37 }
 0x163   :  { %3550 = vmatpush3.msra.mxu0 %v5288_v48  ;;  %3585 = vmatpush3.msra.mxu1 %v6577_v35 }
 0x164   :  { %3551 = vmatprep.subr.mxu0 %v5300_v21  ;;  %3586 = vmatprep.subr.mxu1 %v6578_v9 }
 0x165   :  { %3552 = vmatpush3.msra.mxu0 %v5315_v30  ;;  %3587 = vmatpush3.msra.mxu1 %v6579_v32  ;;  %v6619_v32 = vld [vmem:[#allocation27_spill] sm:$0xff] }
 0x166   :  { %3553 = vmatprep.subr.mxu0 %v5327_v34  ;;  %3588 = vmatprep.subr.mxu1 %v6580_v12  ;;  %v2151_v12 = vrot.slane %v2137_v28, %v4221_v52  ;;  %v6613_v28 = vld [vmem:[#allocation15_spill] sm:$0xff] }
 0x167   :  { %3554 = vmatpush3.msra.mxu0 %v5339_v20  ;;  %2225 = vmatprep.mubr.f32.mxu0 %v2135_v49  ;;  %v6611_v49 = vld [vmem:[#allocation11_spill] sm:$0xff] }
 0x168   :  { %3589 = vmatpush3.msra.mxu1 %v6581_v55  ;;  %2295 = vmatprep.mubr.f32.mxu1 %v2136_v33  ;;  %v6612_v33 = vld [vmem:[#allocation13_spill] sm:$0xff] }
 0x169   :  { %2226 = vmatmul.mubr.f32.vlgmr.msra.gmra.mxu0 %v2127_v0  ;;  %2296 = vmatmul.mubr.f32.vlgmr.msra.gmra.mxu1 %v2134_v5  ;;  %v6609_v0 = vld [vmem:[#allocation7_spill] sm:$0xff]  ;;  %v6610_v5 = vld [vmem:[#allocation9_spill] sm:$0xff] }
 0x16a   :  { %3593 = vmatprep.subr.mxu0 %v5353_v4  ;;  %3781 = vmatprep.subr.mxu1 %v6368_v50 }
 0x16b   :  { %3594 = vmatpush3.msra.mxu0 %v5360_v51  ;;  %3782 = vmatpush3.msra.mxu1 %v6582_v16  ;;  %v6616_v16 = vld [vmem:[#allocation21_spill] sm:$0xff] }
 0x16c   :  { %3595 = vmatprep.subr.mxu0 %v5373_v29  ;;  %3783 = vmatprep.subr.mxu1 %v6368_v50 }
 0x16d   :  { %3596 = vmatpush3.msra.mxu0 %v5380_v27  ;;  %3784 = vmatpush3.msra.mxu1 %v6583_v41 }
 0x16e   :  { %3785 = vmatprep.mubr.msk.f32.mxu1 %vm3924_vm3, %v6368_v50  ;;  %3597 = vmatprep.subr.mxu0 %v6609_v0 }
 0x16f   :  { %3786 = vmatmul.mubr.msk.f32.vlgmr.msra.gmra.mxu1 %vm220_vm2, %v2151_v12  ;;  %3631 = vmatprep.subr.mxu1 %v6584_v13  ;;  %v6614_v12 = vld [vmem:[#allocation17_spill] sm:$0xff]  ;;  %v6615_v13 = vld [vmem:[#allocation19_spill] sm:$0xff] }
 0x170   :  { %3598 = vmatpush3.msra.mxu0 %v6610_v5  ;;  %3632 = vmatpush3.msra.mxu1 %v6585_v14 }
 0x171   :  { %3599 = vmatprep.subr.mxu0 %v6611_v49  ;;  %3633 = vmatprep.subr.mxu1 %v6586_v61 }
 0x172   :  { %3600 = vmatpush3.msra.mxu0 %v6612_v33  ;;  %3634 = vmatpush3.msra.mxu1 %v6587_v22  ;;  %v6617_v22 = vld [vmem:[#allocation23_spill] sm:$0xff] }
 0x173   :  { %3601 = vmatprep.subr.mxu0 %v6613_v28  ;;  %3635 = vmatprep.subr.mxu1 %v6588_v58  ;;  %v3193_v41 = vpop.f32.mrf.mxu0  ;;  %v6618_v58 = vld [vmem:[#allocation25_spill] sm:$0xff] }
 0x174   :  { %3602 = vmatpush3.msra.mxu0 %v6614_v12  ;;  %3636 = vmatpush3.msra.mxu1 %v6589_v18 }
 0x175   :  { %3603 = vmatprep.subr.mxu0 %v6615_v13  ;;  %3637 = vmatprep.subr.mxu1 %v6590_v6  ;;  %v3194_v14 = vpop.f32.mrf.mxu0  ;;  %v6620_v6 = vld [vmem:[#allocation29_spill] sm:$0xff] }
 0x176   :  { %3604 = vmatpush3.msra.mxu0 %v6616_v16  ;;  %3638 = vmatpush3.msra.mxu1 %v6591_v59  ;;  %v3195_v61 = vadd.f32 %v3194_v14, %v3193_v41  ;;  %v6621_v14 = vld [vmem:[#allocation31_spill] sm:$0xff] }
 0x177   :  { %3605 = vmatprep.subr.mxu0 %v6617_v22  ;;  %3639 = vmatprep.subr.mxu1 %v6592_v45  ;;  %v2778_v45 = vsel %vm2774_vm15, 0.0, %v5670_v8  ;;  %v6626_v8 = vld [vmem:[#allocation41_spill] sm:$0xff] }
 0x178   :  { %3606 = vmatpush3.msra.mxu0 %v6618_v58  ;;  %3640 = vmatpush3.msra.mxu1 %v6593_v54  ;;  %v1076_v18 = vadd.f32 %v3195_v61, %v5736_v2  ;;  %v3231_v55 = vpop.f32.mrf.mxu1  ;;  %v6622_v2 = vld [vmem:[#allocation33_spill] sm:$0xff]  ;;  %v6623_v61 = vld [vmem:[#allocation35_spill] sm:$0xff] }
 0x179   :  { %3607 = vmatprep.subr.mxu0 %v6619_v32  ;;  %3641 = vmatprep.subr.mxu1 %v6594_v3 }
 0x17a   :  { %3608 = vmatpush3.msra.mxu0 %v6620_v6  ;;  %3642 = vmatpush3.msra.mxu1 %v5071_v25  ;;  %v1146_v41 = vadd.f32 %v5741_v24, %v1076_v18  ;;  %v3232_v59 = vpop.f32.mrf.mxu1  ;;  %v6624_v25 = vld [vmem:[#allocation37_spill] sm:$0xff]  ;;  %v2144_v18 = vrot.slane %v5777_v63, %v4221_v52  ;;  %v6631_v63 = vld [vmem:[#allocation60_spill] sm:$0xff] }
 0x17b   :  { %3609 = vmatprep.subr.mxu0 %v6621_v14  ;;  %3643 = vmatprep.subr.mxu1 %v5086_v38  ;;  %v5830_v54 = vadd.f32 %v3232_v59, %v3231_v55  ;;  %v129_v24 = vld [vmem:[%s5990_s0 + $0x62] sm:$0xff]  ;;  %v6625_v55 = vld [vmem:[#allocation39_spill] sm:$0xff]  ;;  %v6633_v59 = vld [vmem:[#allocation86_spill] sm:$0xff] }
 0x17c   :  { %3610 = vmatpush3.msra.mxu0 %v6622_v2  ;;  %3644 = vmatpush3.msra.mxu1 %v6595_v56  ;;  %v2779_v3 = vsub.f32 %v1146_v41, %v2778_v45  ;;  %vm145_vm4 = vcmp.le.f32.partialorder %v129_v24, %v6597_v31  ;;  %v6632_v41 = vld [vmem:[#allocation85_spill] sm:$0xff]  ;;  %v6646_v24 = vld [vmem:[#allocation24_spill] sm:$0xff] }
 0x17d   :  { %3611 = vmatprep.subr.mxu0 %v6623_v61  ;;  %3645 = vmatprep.subr.mxu1 %v6596_v23  ;;  %v6627_v23 = vld [vmem:[#allocation43_spill] sm:$0xff]  ;;  %v5863_v31 = vsel %vm145_vm4, 1.0, %v6368_v50 }
 0x17e   :  { %3612 = vmatpush3.msra.mxu0 %v6624_v25  ;;  %3646 = vmatpush3.msra.mxu1 %v6598_v26  ;;  %v2780_v38 = vmul.f32 0.5, %v2779_v3  ;;  %v6628_v26 = vld [vmem:[#allocation45_spill] sm:$0xff] }
 0x17f   :  { %3613 = vmatprep.subr.mxu0 %v6625_v55  ;;  %3647 = vmatprep.subr.mxu1 %v6599_v46  ;;  %v6629_v46 = vld [vmem:[#allocation47_spill] sm:$0xff] }
 0x180   :  { %3614 = vmatpush3.msra.mxu0 %v6626_v8  ;;  %3648 = vmatpush3.msra.mxu1 %v6600_v40  ;;  %v5845_v56 = vadd.f32 %v2780_v38, %v2778_v45  ;;  %v6640_v45 = vld [vmem:[#allocation63_spill] sm:$0xff]  ;;  %v6644_v38 = vld [vmem:[#allocation18_spill] sm:$0xff] }
 0x181   :  { %3615 = vmatprep.subr.mxu0 %v6627_v23  ;;  %3649 = vmatprep.subr.mxu1 %v6601_v7  ;;  %v6630_v7 = vld [vmem:[#allocation53_spill] sm:$0xff] }
 0x182   :  { %3616 = vmatpush3.msra.mxu0 %v6628_v26  ;;  %3650 = vmatpush3.msra.mxu1 %v6602_v11  ;;  %vm2782_vm5 = vcmp.ge.f32.partialorder %v5845_v56, 1.0 }
 0x183   :  { %3617 = vmatprep.subr.mxu0 %v6629_v46  ;;  %3651 = vmatprep.subr.mxu1 %v6603_v17  ;;  %v2869_v40 = vsel %vm2782_vm5, 1.0, %v6368_v50  ;;  %v2152_v17 = vcombine.high %v2144_v18, %v2144_v18 }
 0x184   :  { %3618 = vmatpush3.msra.mxu0 %v6630_v7  ;;  %3652 = vmatpush3.msra.mxu1 %v6604_v44  ;;  %v5866_v11 = vadd.f32 %v2869_v40, %v5687_v60  ;;  %v2450_v44 = vrot.slane %v5863_v31, %v4221_v52  ;;  %v6634_v60 = vld [vmem:[#allocation87_spill] sm:$0xff]  ;;  %v6652_v40 = vld [vmem:[#allocation52_spill] sm:$0xff] }
 0x185   :  { %3619 = vmatprep.subr.mxu0 %v5564_v39  ;;  %3653 = vmatprep.subr.mxu1 %v6605_v1  ;;  %v6635_v1 = vld [vmem:[#allocation88_spill] sm:$0xff] }
 0x186   :  { %3620 = vmatpush3.msra.mxu0 %v6631_v63  ;;  %3654 = vmatpush3.msra.mxu1 %v6606_v19  ;;  %v2458_v19 = vcombine.high %v2450_v44, %v2450_v44 }
 0x187   :  { %3621 = vmatprep.subr.mxu0 %v6632_v41  ;;  %3655 = vmatprep.subr.mxu1 %v6607_v10  ;;  %v3899_v10 = vld [vmem:[%s5992_s2 + $0x1f8] sm:$0xff] }
 0x188   :  { %3622 = vmatpush3.msra.mxu0 %v6633_v59  ;;  %3656 = vmatpush3.msra.mxu1 %v6608_v62  ;;  %v6636_v62 = vld [vmem:[#allocation50_spill] sm:$0xff] }
 0x189   :  { %3623 = vmatprep.subr.mxu0 %v6634_v60  ;;  %3657 = vmatprep.subr.mxu1 %v5276_v15  ;;  %v6637_v15 = vld [vmem:[#allocation55_spill] sm:$0xff] }
 0x18a   :  { %3624 = vmatpush3.msra.mxu0 %v6635_v1  ;;  %2365 = vmatprep.mubr.f32.mxu0 %v2152_v17  ;;  %v6653_v17 = vld [vmem:[#allocation65_spill] sm:$0xff] }
 0x18b   :  { %3658 = vmatpush3.msra.mxu1 %v5288_v48  ;;  %2366 = vmatmul.mubr.f32.vlgmr.msra.gmra.mxu0 %v2144_v18  ;;  %v6638_v48 = vld [vmem:[#allocation58_spill] sm:$0xff] }
 0x18c   :  { %3659 = vmatprep.subr.mxu1 %v5300_v21  ;;  %3666 = vmatprep.subr.mxu0 %v3899_v10  ;;  %v6639_v21 = vld [vmem:[#allocation61_spill] sm:$0xff] }
 0x18d   :  { %3660 = vmatpush3.msra.mxu1 %v5315_v30  ;;  %3667 = vmatpush3.msra.mxu0 %v6636_v62  ;;  %v6641_v30 = vld [vmem:[#allocation6_spill] sm:$0xff] }
 0x18e   :  { %3661 = vmatprep.subr.mxu1 %v5327_v34  ;;  %3668 = vmatprep.subr.mxu0 %v6637_v15  ;;  %v6642_v34 = vld [vmem:[#allocation10_spill] sm:$0xff] }
 0x18f   :  { %3662 = vmatpush3.msra.mxu1 %v5339_v20  ;;  %2548 = vmatprep.mubr.f32.mxu1 %v2458_v19  ;;  %v6643_v20 = vld [vmem:[#allocation14_spill] sm:$0xff] }
 0x190   :  { %3669 = vmatpush3.msra.mxu0 %v6638_v48  ;;  %2549 = vmatmul.mubr.f32.vlgmr.msra.gmra.mxu1 %v2450_v44  ;;  %v6654_v44 = vld [vmem:[#allocation67_spill] sm:$0xff] }
 0x191   :  { %3670 = vmatprep.subr.mxu0 %v6639_v21  ;;  %3701 = vmatprep.subr.mxu1 %v5353_v4  ;;  %v6645_v4 = vld [vmem:[#allocation22_spill] sm:$0xff] }
 0x192   :  { %3671 = vmatpush3.msra.mxu0 %v6640_v45  ;;  %3702 = vmatpush3.msra.mxu1 %v5360_v51 }
 0x193   :  { %3672 = vmatprep.subr.mxu0 %v6641_v30  ;;  %3703 = vmatprep.subr.mxu1 %v5373_v29 }
 0x194   :  { %3673 = vmatpush3.msra.mxu0 %v6642_v34  ;;  %3704 = vmatpush3.msra.mxu1 %v5380_v27 }
 0x195   :  { %3674 = vmatprep.subr.mxu0 %v6643_v20  ;;  %3705 = vmatprep.subr.mxu1 %v6609_v0  ;;  %v3266_v3 = vpop.f32.mrf.mxu0 }
 0x196   :  { %3675 = vmatpush3.msra.mxu0 %v6644_v38  ;;  %3706 = vmatpush3.msra.mxu1 %v6610_v5  ;;  %v6647_v5 = vld [vmem:[#allocation30_spill] sm:$0xff] }
 0x197   :  { %3676 = vmatprep.subr.mxu0 %v6645_v4  ;;  %3707 = vmatprep.subr.mxu1 %v6611_v49  ;;  %v3267_v51 = vpop.f32.mrf.mxu0  ;;  %v6648_v49 = vld [vmem:[#allocation34_spill] sm:$0xff] }
 0x198   :  { %3677 = vmatpush3.msra.mxu0 %v6646_v24  ;;  %3708 = vmatpush3.msra.mxu1 %v6612_v33  ;;  %v3268_v29 = vadd.f32 %v3267_v51, %v3266_v3 }
 0x199   :  { %3678 = vmatprep.subr.mxu0 %v5092_v47  ;;  %3709 = vmatprep.subr.mxu1 %v6613_v28  ;;  %v6649_v47 = vld [vmem:[#allocation38_spill] sm:$0xff] }
 0x19a   :  { %3679 = vmatpush3.msra.mxu0 %v5104_v42  ;;  %3710 = vmatpush3.msra.mxu1 %v6614_v12  ;;  %v1329_v27 = vadd.f32 %v3268_v29, %v5830_v54  ;;  %v3301_v0 = vpop.f32.mrf.mxu1  ;;  %v130_v28 = vld [vmem:[%s5990_s0 + $0x6a] sm:$0x3f]  ;;  %s3925_s0 = smov [#allocation2]  }
 0x19b   :  { %3680 = vmatprep.subr.mxu0 %v6647_v5  ;;  %3711 = vmatprep.subr.mxu1 %v6615_v13  ;;  %v6650_v12 = vld [vmem:[#allocation42_spill] sm:$0xff]  ;;  %vm146_vm6 = vcmp.le.f32.partialorder %v130_v28, %v6572_v36  ;;  %s2835_s9 = sshll.u32 %s3925_s0, 4  ;;  %s2836_s9 = int_to_ptr.vmem [resolvable:$true] %s2835_s9 }
 0x19c   :  { %3681 = vmatpush3.msra.mxu0 %v6648_v49  ;;  %3712 = vmatpush3.msra.mxu1 %v6616_v16  ;;  %v1468_v33 = vpop.f32.mrf.mxu0  ;;  %v3302_v18 = vpop.f32.mrf.mxu1  ;;  %v6651_v54 = vld [vmem:[#allocation46_spill] sm:$0xff]  ;;  %v2858_v36 = vsel %vm146_vm6, 1.0, %v6368_v50  ;;  %s3900_s10 = scalar_lea.vmem %s2836_s9, 32  ;;  %p3905_p1 = scmp.lt.s32.totalorder %s2836_s9, %s2836_s9 }
 0x19d   :  { %3682 = vmatprep.subr.mxu0 %v6649_v47  ;;  %3713 = vmatprep.subr.mxu1 %v6617_v22  ;;  %v3303_v42 = vadd.f32 %v3302_v18, %v3301_v0  ;;  %v2443_v22 = vcombine.high %v5863_v31, %v5863_v31  ;;  %v6655_v31 = vld [vmem:[#allocation73_spill] sm:$0xff]  ;;  %p3901_p0 = scmp.ne.s32.totalorder %s2836_s9, %s3900_s10  ;;  %p3906_p2 = scmp.lt.s32.totalorder %s3900_s10, %s3900_s10 }
 0x19e   :  { %3683 = vmatpush3.msra.mxu0 %v6650_v12  ;;  %3714 = vmatpush3.msra.mxu1 %v6618_v58  ;;  %v3766_v13 = vpop.f32.mrf.mxu0 }
 0x19f   :  { %3684 = vmatprep.subr.mxu0 %v6651_v54  ;;  %3715 = vmatprep.subr.mxu1 %v6619_v32  ;;  %v1399_v16 = vadd.f32 %v3303_v42, %v1329_v27  ;;  %v2786_v32 = vsel %vm2782_vm5, 0.0, %v5845_v56  ;;  %v6659_v56 = vld [vmem:[#allocation83_spill] sm:$0xff]  ;;  %p3907_p3 = por %p3906_p2, %p3905_p1 }
 0x1a0   :  { %3685 = vmatpush3.msra.mxu0 %v6652_v40  ;;  %3716 = vmatpush3.msra.mxu1 %v6620_v6 }
 0x1a1   :  { %3686 = vmatprep.subr.mxu0 %v6653_v17  ;;  %3717 = vmatprep.subr.mxu1 %v6621_v14  ;;  %v1469_v58 = vadd.f32 %v1468_v33, %v1399_v16  ;;  %v2457_v14 = vrot.slane %v2443_v22, %v4221_v52  ;;  %p3908_p4 = pnand %p3907_p3, %p3901_p0 }
 0x1a2   :  { %3687 = vmatpush3.msra.mxu0 %v6654_v44  ;;  %3718 = vmatpush3.msra.mxu1 %v6622_v2 }
 0x1a3   :  { %3688 = vmatprep.subr.mxu0 %v6571_v43  ;;  %3719 = vmatprep.subr.mxu1 %v6623_v61  ;;  %v2787_v6 = vsub.f32 %v1469_v58, %v2786_v32  ;;  %v2467_v43 = vrot.slane %v2858_v36, %v4221_v52  ;;  %v2459_v61 = vcombine.high %v2457_v14, %v2457_v14 }
 0x1a4   :  { %3689 = vmatpush3.msra.mxu0 %v6573_v53  ;;  %3720 = vmatpush3.msra.mxu1 %v6624_v25 }
 0x1a5   :  { %3690 = vmatprep.subr.mxu0 %v6655_v31  ;;  %3721 = vmatprep.subr.mxu1 %v6625_v55  ;;  %v2788_v2 = vmul.f32 0.5, %v2787_v6  ;;  %v2475_v25 = vcombine.high %v2467_v43, %v2467_v43  ;;  %v6657_v55 = vld [vmem:[#allocation81_spill] sm:$0xff] }
 0x1a6   :  { %3691 = vmatpush3.msra.mxu0 %v6575_v57  ;;  %3722 = vmatpush3.msra.mxu1 %v6626_v8  ;;  %v6656_v57 = vld [vmem:[#allocation80_spill] sm:$0xff]  ;;  %v6658_v8 = vld [vmem:[#allocation82_spill] sm:$0xff] }
 0x1a7   :  { %3692 = vmatprep.subr.mxu0 %v6576_v37  ;;  %3723 = vmatprep.subr.mxu1 %v6627_v23  ;;  %v2789_v53 = vadd.f32 %v2788_v2, %v2786_v32  ;;  %v6660_v23 = vld [vmem:[#allocation84_spill] sm:$0xff] }
 0x1a8   :  { %3693 = vmatpush3.msra.mxu0 %v6577_v35  ;;  %3724 = vmatpush3.msra.mxu1 %v6628_v26 }
 0x1a9   :  { %3694 = vmatprep.subr.mxu0 %v6578_v9  ;;  %3725 = vmatprep.subr.mxu1 %v6629_v46  ;;  %vm2790_vm7 = vcmp.ge.f32.partialorder %v2789_v53, 1.0  ;;  %v2460_v9 = vcombine.high %v2858_v36, %v2858_v36 }
 0x1aa   :  { %3695 = vmatpush3.msra.mxu0 %v6656_v57  ;;  %3726 = vmatpush3.msra.mxu1 %v6630_v7  ;;  %v2870_v37 = vsel %vm2790_vm7, 1.0, %v6368_v50  ;;  %v2794_v48 = vsel %vm2790_vm7, 0.0, %v2789_v53 }
 0x1ab   :  { %3696 = vmatprep.subr.mxu0 %v6657_v55  ;;  %3727 = vmatprep.subr.mxu1 %v5564_v39  ;;  %v2793_v35 = vadd.f32 %v2870_v37, %v5866_v11  ;;  %v2474_v39 = vrot.slane %v2460_v9, %v4221_v52 }
 0x1ac   :  { %3697 = vmatpush3.msra.mxu0 %v6658_v8  ;;  %2618 = vmatprep.mubr.f32.mxu0 %v2459_v61 }
 0x1ad   :  { %3728 = vmatpush3.msra.mxu1 %v6631_v63  ;;  %2619 = vmatmul.mubr.f32.vlgmr.msra.gmra.mxu0 %v2457_v14 }
 0x1ae   :  { %3729 = vmatprep.subr.mxu1 %v6632_v41  ;;  %2688 = vmatprep.mubr.f32.mxu1 %v2475_v25 }
 0x1af   :  { %3730 = vmatpush3.msra.mxu1 %v6633_v59  ;;  %3788 = vmatprep.subr.mxu0 %v6368_v50 }
 0x1b0   :  { %3731 = vmatprep.subr.mxu1 %v6634_v60  ;;  %3789 = vmatpush3.msra.mxu0 %v6659_v56 }
 0x1b1   :  { %3732 = vmatpush3.msra.mxu1 %v6635_v1  ;;  %3790 = vmatprep.subr.mxu0 %v6368_v50 }
 0x1b2   :  { %2689 = vmatmul.mubr.f32.vlgmr.msra.gmra.mxu1 %v2467_v43  ;;  %3791 = vmatpush3.msra.mxu0 %v6660_v23 }
 0x1b3   :  { %3792 = vmatprep.mubr.msk.f32.mxu0 %vm3924_vm3, %v6368_v50 }
 0x1b4   :  { %3793 = vmatmul.mubr.msk.f32.vlgmr.msra.gmra.mxu0 %vm220_vm2, %v2474_v39 }
 0x1bd   :  { %v3339_v26 = vpop.f32.mrf.mxu0  ;;  %v3374_v46 = vpop.f32.mrf.mxu1 }
 0x1bf   :  { %v3340_v7 = vpop.f32.mrf.mxu0  ;;  %v3375_v11 = vpop.f32.mrf.mxu1 }
 0x1c0   :  { %v3341_v63 = vadd.f32 %v3340_v7, %v3339_v26  ;;  %v3376_v52 = vadd.f32 %v3375_v11, %v3374_v46 }
 0x1c2   :  { %v1652_v41 = vadd.f32 %v3376_v52, %v3341_v63 }
 0x1c3   :  { %v1791_v59 = vpop.f32.mrf.mxu1 }
 0x1c5   :  { %v3773_v60 = vpop.f32.mrf.mxu1 }
 0x1df   :  { %v3409_v1 = vpop.f32.mrf.mxu0 }
 0x1e1   :  { %v3410_v19 = vpop.f32.mrf.mxu0 }
 0x1e2   :  { %v3411_v10 = vadd.f32 %v3410_v19, %v3409_v1 }
 0x1e4   :  { %v1722_v62 = vadd.f32 %v3411_v10, %v1652_v41  ;;  %v3447_v3 = vpop.f32.mrf.mxu1 }
 0x1e6   :  { %v1792_v15 = vadd.f32 %v1791_v59, %v1722_v62  ;;  %v3448_v51 = vpop.f32.mrf.mxu1 }
 0x1e7   :  { %v3449_v27 = vadd.f32 %v3448_v51, %v3447_v3 }
 0x1e8   :  { %v2795_v21 = vsub.f32 %v1792_v15, %v2794_v48 }
 0x1ea   :  { %v2796_v45 = vmul.f32 0.5, %v2795_v21 }
 0x1ec   :  { %v2797_v30 = vadd.f32 %v2796_v45, %v2794_v48 }
 0x1ee   :  { %vm2798_vm2 = vcmp.ge.f32.partialorder %v2797_v30, 1.0 }
 0x1ef   :  { %v2871_v34 = vsel %vm2798_vm2, 1.0, %v6368_v50  ;;  %v2802_v28 = vsel %vm2798_vm2, 0.0, %v2797_v30 }
 0x1f0   :  { %v2801_v20 = vadd.f32 %v2871_v34, %v2793_v35 }
 0x201   :  { %v3482_v38 = vpop.f32.mrf.mxu0 }
 0x203   :  { %v3483_v4 = vpop.f32.mrf.mxu0 }
 0x204   :  { %v3484_v24 = vadd.f32 %v3483_v4, %v3482_v38 }
 0x206   :  { %v3517_v29 = vpop.f32.mrf.mxu1  ;;  %v1975_v49 = vadd.f32 %v3484_v24, %v3449_v27 }
 0x208   :  { %v2114_v0 = vpop.f32.mrf.mxu0  ;;  %v3518_v5 = vpop.f32.mrf.mxu1 }
 0x209   :  { %v3519_v33 = vadd.f32 %v3518_v5, %v3517_v29 }
 0x20a   :  { %v3780_v18 = vpop.f32.mrf.mxu0 }
 0x20b   :  { %v2045_v47 = vadd.f32 %v3519_v33, %v1975_v49 }
 0x20d   :  { %v2115_v42 = vadd.f32 %v2114_v0, %v2045_v47 }
 0x20f   :  { %v2803_v12 = vsub.f32 %v2115_v42, %v2802_v28 }
 0x211   :  { %v2804_v13 = vmul.f32 0.5, %v2803_v12 }
 0x213   :  { %v2805_v54 = vadd.f32 %v2804_v13, %v2802_v28 }
 0x215   :  { %vm2806_vm3 = vcmp.ge.f32.partialorder %v2805_v54, 1.0 }
 0x216   :  { %v2872_v16 = vsel %vm2806_vm3, 1.0, %v6368_v50  ;;  %v2810_v25 = vsel %vm2806_vm3, 0.0, %v2805_v54 }
 0x217   :  { %v2809_v40 = vadd.f32 %v2872_v16, %v2801_v20 }
 0x229   :  { %v3590_v22 = vpop.f32.mrf.mxu1  ;;  %v3555_v32 = vpop.f32.mrf.mxu0 }
 0x22b   :  { %v3591_v17 = vpop.f32.mrf.mxu1  ;;  %v3556_v6 = vpop.f32.mrf.mxu0 }
 0x22c   :  { %v3557_v36 = vadd.f32 %v3556_v6, %v3555_v32  ;;  %v3592_v14 = vadd.f32 %v3591_v17, %v3590_v22 }
 0x22e   :  { %v2298_v43 = vadd.f32 %v3592_v14, %v3557_v36 }
 0x22f   :  { %v2437_v58 = vpop.f32.mrf.mxu1 }
 0x231   :  { %v3787_v44 = vpop.f32.mrf.mxu1 }
 0x24b   :  { %v3625_v31 = vpop.f32.mrf.mxu0 }
 0x24d   :  { %v3626_v2 = vpop.f32.mrf.mxu0 }
 0x24e   :  { %v3627_v53 = vadd.f32 %v3626_v2, %v3625_v31 }
 0x250   :  { %v2368_v61 = vadd.f32 %v3627_v53, %v2298_v43  ;;  %v3663_v39 = vpop.f32.mrf.mxu1 }
 0x252   :  { %v2438_v57 = vadd.f32 %v2437_v58, %v2368_v61  ;;  %v3664_v26 = vpop.f32.mrf.mxu1 }
 0x253   :  { %v3665_v11 = vadd.f32 %v3664_v26, %v3663_v39 }
 0x254   :  { %v2811_v37 = vsub.f32 %v2438_v57, %v2810_v25 }
 0x256   :  { %v2812_v55 = vmul.f32 0.5, %v2811_v37 }
 0x258   :  { %v2813_v35 = vadd.f32 %v2812_v55, %v2810_v25 }
 0x25a   :  { %vm2814_vm8 = vcmp.ge.f32.partialorder %v2813_v35, 1.0 }
 0x25b   :  { %v2873_v8 = vsel %vm2814_vm8, 1.0, %v6368_v50  ;;  %v2818_v10 = vsel %vm2814_vm8, 0.0, %v2813_v35 }
 0x25c   :  { %v2817_v9 = vadd.f32 %v2873_v8, %v2809_v40 }
 0x26d   :  { %v3698_v56 = vpop.f32.mrf.mxu0 }
 0x26f   :  { %v3699_v23 = vpop.f32.mrf.mxu0 }
 0x270   :  { %v3700_v46 = vadd.f32 %v3699_v23, %v3698_v56 }
 0x272   :  { %v3733_v7 = vpop.f32.mrf.mxu1  ;;  %v2621_v41 = vadd.f32 %v3700_v46, %v3665_v11 }
 0x274   :  { %v3734_v63 = vpop.f32.mrf.mxu1  ;;  %v2760_v52 = vpop.f32.mrf.mxu0 }
 0x275   :  { %v3735_v59 = vadd.f32 %v3734_v63, %v3733_v7 }
 0x276   :  { %v3794_v60 = vpop.f32.mrf.mxu0 }
 0x277   :  { %v2691_v1 = vadd.f32 %v3735_v59, %v2621_v41 }
 0x279   :  { %v2761_v19 = vadd.f32 %v2760_v52, %v2691_v1 }
 0x27b   :  { %v2819_v62 = vsub.f32 %v2761_v19, %v2818_v10 }
 0x27d   :  { %v2820_v15 = vmul.f32 0.5, %v2819_v62 }
 0x27f   :  { %v2821_v48 = vadd.f32 %v2820_v15, %v2818_v10 }
 0x281   :  { %vm2822_vm9 = vcmp.ge.f32.partialorder %v2821_v48, 1.0 }
 0x282   :  { %v2874_v21 = vsel %vm2822_vm9, 1.0, %v6368_v50 }
 0x283   :  { %v2825_v45 = vadd.f32 %v2874_v21, %v2817_v9 }
 0x285   :  { %v2826_v30 = vmul.f32 0.125, %v2825_v45 }
 0x287   :  { %2828 = vst.msk [vmem:[#allocation2] sm:$0x3] %vm2827_vm10, %v2826_v30 }
 0x288   :  { %3911 = shalt.err (!%p3908_p4)
}
 0x289   :  { %2838 = dma.vmem_to_hbm [thread:$0]  %s2836_s9, 32, %s5993_s3, [#allocation3]  }
 0x28a   :  { %3920 = dma.done.wait [#allocation3], 32  }
 0x28b   :  { %3921 = vsyncadd [#allocation3], 4294967264 }
 0x28c   :  { %2842 = vsyncpa [#allocation3], 1 }

</bundles_post_ra>
